<compile_context>
chip_gen: v7x
topology: tpu7x:2x2x1
jax: 0.10.0
libtpu: 0.0.40
codegen_flags: <defaults>
</compile_context>

<pallas_src>
import functools

import jax
import jax.numpy as jnp
from jax import lax
from jax.experimental import pallas as pl
from jax.experimental.pallas import tpu as pltpu


# ----------------------------- tiling helpers --------------------------------

def _pick_tile(dim, target, align):
    """Largest tile <= target that is either the full dim or an `align`-multiple divisor."""
    if dim <= target:
        return dim                      # full-dim block is always legal
    t = (target // align) * align
    while t >= align:
        if dim % t == 0:
            return t
        t -= align
    return dim                          # fallback: whole dim (pad dims at real scale)


_VMEM_LIMIT = 48 * 1024 * 1024          # safe on v7x (64 MiB); v5e/v6e could go higher


# ----------------------------- Pallas kernels --------------------------------

def _linear_kernel(x_ref, w_ref, b_ref, o_ref, acc_ref, *, activation):
    # y = x @ w + b, bf16 inputs, f32 VMEM accumulator over the K grid axis.
    @pl.when(pl.program_id(2) == 0)
    def _():
        acc_ref[...] = jnp.zeros_like(acc_ref)

    acc_ref[...] += jnp.dot(x_ref[...], w_ref[...],
                            preferred_element_type=jnp.float32)

    @pl.when(pl.program_id(2) == pl.num_programs(2) - 1)
    def _():
        y = acc_ref[...] + b_ref[...]
        if activation == "relu":
            y = jnp.maximum(y, 0.0)
        o_ref[...] = y.astype(o_ref.dtype)


def linear(x, w, b, activation=None, out_dtype=jnp.bfloat16, *, tm=256, tn=512, tk=512):
    """x: (M, Din) bf16, w: (Din, Dout) bf16, b: (1, Dout) f32 -> (M, Dout) out_dtype."""
    m, kdim = x.shape
    n = w.shape[1]
    tm = _pick_tile(m, tm, 8)
    tn = _pick_tile(n, tn, 128)
    tk = _pick_tile(kdim, tk, 128)
    grid = (m // tm, n // tn, kdim // tk)

    return pl.pallas_call(
        functools.partial(_linear_kernel, activation=activation),
        grid_spec=pltpu.PrefetchScalarGridSpec(
            num_scalar_prefetch=0,
            grid=grid,
            in_specs=[
                pl.BlockSpec((tm, tk), lambda i, j, k: (i, k)),
                pl.BlockSpec((tk, tn), lambda i, j, k: (k, j)),
                pl.BlockSpec((1, tn), lambda i, j, k: (0, j)),
            ],
            out_specs=pl.BlockSpec((tm, tn), lambda i, j, k: (i, j)),
            scratch_shapes=[pltpu.VMEM((tm, tn), jnp.float32)],
        ),
        out_shape=jax.ShapeDtypeStruct((m, n), out_dtype),
        compiler_params=pltpu.CompilerParams(
            dimension_semantics=("parallel", "parallel", "arbitrary"),
            vmem_limit_bytes=_VMEM_LIMIT,
        ),
        cost_estimate=pl.CostEstimate(
            flops=2 * m * n * kdim,
            transcendentals=0,
            bytes_accessed=2 * (m * kdim + kdim * n + m * n) + 4 * n,
        ),
    )(x, w, b)


def _ffn_kernel(x_ref, w1_ref, b1_ref, w2_ref, b2_ref, o_ref):
    # Fused linear -> ReLU -> linear; hidden tile never leaves VMEM.
    h = jnp.dot(x_ref[...], w1_ref[...], preferred_element_type=jnp.float32) + b1_ref[...]
    h = jnp.maximum(h, 0.0).astype(w2_ref.dtype)
    y = jnp.dot(h, w2_ref[...], preferred_element_type=jnp.float32) + b2_ref[...]
    o_ref[...] = y.astype(o_ref.dtype)


def feed_forward(x, p, *, tm=256):
    """x: (M, E) bf16 -> (M, E) bf16.  Keeps the (tm, F) hidden activation in VMEM."""
    m, e = x.shape
    f = p["w1"].shape[1]
    tm = _pick_tile(m, tm, 8)
    # TODO(synk): at the real scale (E~2944, F=2048) tile the weights along F/E
    # (nested K loop / emit_pipeline) so the fused FFN stays inside v7x's 64 MiB VMEM.
    return pl.pallas_call(
        _ffn_kernel,
        grid_spec=pltpu.PrefetchScalarGridSpec(
            num_scalar_prefetch=0,
            grid=(m // tm,),
            in_specs=[
                pl.BlockSpec((tm, e), lambda i: (i, 0)),
                pl.BlockSpec((e, f), lambda i: (0, 0)),
                pl.BlockSpec((1, f), lambda i: (0, 0)),
                pl.BlockSpec((f, e), lambda i: (0, 0)),
                pl.BlockSpec((1, e), lambda i: (0, 0)),
            ],
            out_specs=pl.BlockSpec((tm, e), lambda i: (i, 0)),
        ),
        out_shape=jax.ShapeDtypeStruct((m, e), jnp.bfloat16),
        compiler_params=pltpu.CompilerParams(
            dimension_semantics=("parallel",),
            vmem_limit_bytes=_VMEM_LIMIT,
        ),
        cost_estimate=pl.CostEstimate(
            flops=4 * m * e * f,
            transcendentals=0,
            bytes_accessed=2 * (2 * m * e + 2 * e * f) + 4 * (e + f),
        ),
    )(x, p["w1"], p["b1"], p["w2"], p["b2"])


def _ln_kernel(x_ref, g_ref, b_ref, o_ref, *, eps):
    x = x_ref[...].astype(jnp.float32)
    mean = jnp.mean(x, axis=-1, keepdims=True)
    c = x - mean
    var = jnp.mean(c * c, axis=-1, keepdims=True)
    o_ref[...] = ((c * lax.rsqrt(var + eps)) * g_ref[...] + b_ref[...]).astype(o_ref.dtype)


def _add_ln_kernel(x_ref, r_ref, g_ref, b_ref, o_ref, *, eps):
    h = x_ref[...].astype(jnp.float32) + r_ref[...].astype(jnp.float32)
    mean = jnp.mean(h, axis=-1, keepdims=True)
    c = h - mean
    var = jnp.mean(c * c, axis=-1, keepdims=True)
    o_ref[...] = ((c * lax.rsqrt(var + eps)) * g_ref[...] + b_ref[...]).astype(o_ref.dtype)


def layernorm(x, gamma, beta, eps=1e-5, *, tm=256):
    """LayerNorm(x) over last dim.  x: (N, E) bf16; gamma,beta: (1, E) f32."""
    n, e = x.shape
    tm = _pick_tile(n, tm, 8)
    return pl.pallas_call(
        functools.partial(_ln_kernel, eps=eps),
        grid_spec=pltpu.PrefetchScalarGridSpec(
            num_scalar_prefetch=0,
            grid=(n // tm,),
            in_specs=[
                pl.BlockSpec((tm, e), lambda i: (i, 0)),
                pl.BlockSpec((1, e), lambda i: (0, 0)),
                pl.BlockSpec((1, e), lambda i: (0, 0)),
            ],
            out_specs=pl.BlockSpec((tm, e), lambda i: (i, 0)),
        ),
        out_shape=jax.ShapeDtypeStruct((n, e), jnp.bfloat16),
        compiler_params=pltpu.CompilerParams(
            dimension_semantics=("parallel",),
            vmem_limit_bytes=_VMEM_LIMIT,
        ),
    )(x, gamma, beta)


def add_layernorm(x, res, gamma, beta, eps=1e-5, *, tm=256):
    """LayerNorm(x + res) over last dim.  x,res: (N, E) bf16; gamma,beta: (1, E) f32."""
    n, e = x.shape
    tm = _pick_tile(n, tm, 8)
    return pl.pallas_call(
        functools.partial(_add_ln_kernel, eps=eps),
        grid_spec=pltpu.PrefetchScalarGridSpec(
            num_scalar_prefetch=0,
            grid=(n // tm,),
            in_specs=[
                pl.BlockSpec((tm, e), lambda i: (i, 0)),
                pl.BlockSpec((tm, e), lambda i: (i, 0)),
                pl.BlockSpec((1, e), lambda i: (0, 0)),
                pl.BlockSpec((1, e), lambda i: (0, 0)),
            ],
            out_specs=pl.BlockSpec((tm, e), lambda i: (i, 0)),
        ),
        out_shape=jax.ShapeDtypeStruct((n, e), jnp.bfloat16),
        compiler_params=pltpu.CompilerParams(
            dimension_semantics=("parallel",),
            vmem_limit_bytes=_VMEM_LIMIT,
        ),
    )(x, res, gamma, beta)


def _attn_kernel(q_ref, k_ref, v_ref, o_ref, m_sc, l_sc, acc_sc, *, scale, heads, n_kv):
    """One batch element, all heads, one KV block per step (flash over the kv axis)."""
    kvi = pl.program_id(1)
    e = q_ref.shape[-1]
    dh = e // heads

    if n_kv > 1:
        @pl.when(kvi == 0)
        def _():
            m_sc[...] = jnp.full_like(m_sc, -jnp.inf)
            l_sc[...] = jnp.zeros_like(l_sc)
            acc_sc[...] = jnp.zeros_like(acc_sc)

    q = q_ref[0]            # (S, E) bf16
    k = k_ref[0]            # (Tkv, E) bf16
    v = v_ref[0]            # (Tkv, E) bf16

    outs = []
    for h in range(heads):  # static loop; all head math stays in VMEM
        sl = slice(h * dh, (h + 1) * dh)
        qh = q[:, sl]
        kh = k[:, sl]
        vh = v[:, sl]
        # Contract on the last dims directly so the MXU consumes K untransposed.
        s = lax.dot_general(qh, kh, (((1,), (1,)), ((), ())),
                            preferred_element_type=jnp.float32) * scale   # (S, Tkv)
        if n_kv == 1:
            # Single KV block: plain softmax, no online-rescale bookkeeping.
            m = jnp.max(s, axis=-1, keepdims=True)
            p = jnp.exp(s - m)
            l = jnp.sum(p, axis=-1, keepdims=True)
            oh = jnp.dot(p.astype(vh.dtype), vh, preferred_element_type=jnp.float32)
            outs.append(oh * pl.reciprocal(l, approx=True))
        else:
            m_prev = m_sc[h]                                            # (S, 1)
            m_new = jnp.maximum(m_prev, jnp.max(s, axis=-1, keepdims=True))
            alpha = jnp.exp(m_prev - m_new)
            p = jnp.exp(s - m_new)
            l_sc[h] = alpha * l_sc[h] + jnp.sum(p, axis=-1, keepdims=True)
            acc_sc[h] = alpha * acc_sc[h] + jnp.dot(p.astype(vh.dtype), vh,
                                                    preferred_element_type=jnp.float32)
            m_sc[h] = m_new

    if n_kv == 1:
        o_ref[0] = jnp.concatenate(outs, axis=-1).astype(o_ref.dtype)
    else:
        @pl.when(kvi == n_kv - 1)
        def _():
            normed = [acc_sc[h] * pl.reciprocal(l_sc[h], approx=True)
                      for h in range(heads)]
            o_ref[0] = jnp.concatenate(normed, axis=-1).astype(o_ref.dtype)


def attention_core(q_src, k_src, v_src, *, e, heads, cols, tkv=1024,
                   out_dtype=jnp.bfloat16):
    """q_src: (B, S, Cq*E), k_src/v_src: (B, Skv, Ck*E).  `cols` are column-block indices
    (units of E) selecting Q/K/V out of (possibly fused) projection outputs."""
    b, s, _ = q_src.shape
    skv = k_src.shape[1]
    dh = e // heads
    scale = 1.0 / (dh ** 0.5)
    tkv = _pick_tile(skv, tkv, 8)
    n_kv = skv // tkv
    qc, kc, vc = cols

    return pl.pallas_call(
        functools.partial(_attn_kernel, scale=scale, heads=heads, n_kv=n_kv),
        grid_spec=pltpu.PrefetchScalarGridSpec(
            num_scalar_prefetch=0,
            grid=(b, n_kv),
            in_specs=[
                pl.BlockSpec((1, s, e), lambda i, j: (i, 0, qc)),
                pl.BlockSpec((1, tkv, e), lambda i, j: (i, j, kc)),
                pl.BlockSpec((1, tkv, e), lambda i, j: (i, j, vc)),
            ],
            out_specs=pl.BlockSpec((1, s, e), lambda i, j: (i, 0, 0)),
            scratch_shapes=[pltpu.VMEM((heads, s, 1), jnp.float32),
                            pltpu.VMEM((heads, s, 1), jnp.float32),
                            pltpu.VMEM((heads, s, dh), jnp.float32)],
        ),
        out_shape=jax.ShapeDtypeStruct((b, s, e), out_dtype),
        compiler_params=pltpu.CompilerParams(
            dimension_semantics=("parallel", "arbitrary"),
            vmem_limit_bytes=_VMEM_LIMIT,
        ),
        cost_estimate=pl.CostEstimate(
            flops=4 * b * heads * s * skv * dh,
            transcendentals=b * heads * s * skv,
            bytes_accessed=2 * b * (2 * s * e + 2 * skv * e),
        ),
    )(q_src, k_src, v_src)


# ------------------------- model building blocks ------------------------------

def self_attention(x, p, heads):
    """x: (B, S, E) bf16 -> (B, S, E) bf16."""
    b, s, e = x.shape
    qkv = linear(x.reshape(b * s, e), p["wqkv"], p["bqkv"]).reshape(b, s, 3 * e)
    if e % 128 == 0:
        # Q/K/V read straight out of the fused projection via column block indices.
        o = attention_core(qkv, qkv, qkv, e=e, heads=heads, cols=(0, 1, 2))
    else:
        # TODO(synk): pad E to a 128 multiple so this XLA slice fallback disappears.
        q, k, v = qkv[..., :e], qkv[..., e:2 * e], qkv[..., 2 * e:]
        o = attention_core(q, k, v, e=e, heads=heads, cols=(0, 0, 0))
    o = linear(o.reshape(b * s, e), p["wo"], p["bo"])
    return o.reshape(b, s, e)


def cross_attention(x, mem, p, heads):
    """x: (B, S, E), mem: (B, Skv, E) -> (B, S, E)."""
    b, s, e = x.shape
    skv = mem.shape[1]
    q = linear(x.reshape(b * s, e), p["wq"], p["bq"]).reshape(b, s, e)
    kv = linear(mem.reshape(b * skv, e), p["wkv"], p["bkv"]).reshape(b, skv, 2 * e)
    if e % 128 == 0:
        o = attention_core(q, kv, kv, e=e, heads=heads, cols=(0, 0, 1))
    else:
        k, v = kv[..., :e], kv[..., e:]
        o = attention_core(q, k, v, e=e, heads=heads, cols=(0, 0, 0))
    o = linear(o.reshape(b * s, e), p["wo"], p["bo"])
    return o.reshape(b, s, e)


def encoder_layer(x, p, heads):
    b, s, e = x.shape
    x_flat = x.reshape(b * s, e)
    sa = self_attention(x, p["self_attn"], heads).reshape(b * s, e)
    x_flat = add_layernorm(x_flat, sa, p["ln1_g"], p["ln1_b"])
    ff = feed_forward(x_flat, p["ffn"])
    x_flat = add_layernorm(x_flat, ff, p["ln2_g"], p["ln2_b"])
    return x_flat.reshape(b, s, e)


def decoder_layer(x, mem, p, heads):
    b, s, e = x.shape
    x_flat = x.reshape(b * s, e)
    sa = self_attention(x, p["self_attn"], heads).reshape(b * s, e)
    x_flat = add_layernorm(x_flat, sa, p["ln1_g"], p["ln1_b"])
    ca = cross_attention(x_flat.reshape(b, s, e), mem,
                         p["cross_attn"], heads).reshape(b * s, e)
    x_flat = add_layernorm(x_flat, ca, p["ln2_g"], p["ln2_b"])
    ff = feed_forward(x_flat, p["ffn"])
    x_flat = add_layernorm(x_flat, ff, p["ln3_g"], p["ln3_b"])
    return x_flat.reshape(b, s, e)


def transformer_forward(x_ids, params, heads):
    """x_ids: (S, B) int32 -> logits (S, B, vocab) f32."""
    s, b = x_ids.shape
    # Gather directly into batch-major (B, S, E) layout (no big activation transpose).
    emb = jnp.take(params["embedding"], x_ids.T, axis=0)   # gather glue stays in XLA
    e = emb.shape[-1]

    # encoder
    mem = emb
    for lp in params["enc_layers"]:
        mem = encoder_layer(mem, lp, heads)
    mem = layernorm(mem.reshape(b * s, e),
                    params["enc_norm_g"], params["enc_norm_b"]).reshape(b, s, e)

    # decoder (tgt == src, as forward() calls transformer(x, x))
    out = emb
    for lp in params["dec_layers"]:
        out = decoder_layer(out, mem, lp, heads)
    out_flat = layernorm(out.reshape(b * s, e),
                         params["dec_norm_g"], params["dec_norm_b"])

    # TODO(synk): pad vocab to a 128 multiple at real scale for lane-dense stores.
    logits = linear(out_flat, params["fc_w"], params["fc_b"], out_dtype=jnp.float32)
    logits = logits.reshape(b, s, -1)
    return jnp.transpose(logits, (1, 0, 2))                 # back to (S, B, vocab)


# ------------------------------ param init -----------------------------------

def _lin_params(key, din, dout):
    w = (0.02 * jax.random.normal(key, (din, dout))).astype(jnp.bfloat16)
    b = jnp.zeros((1, dout), jnp.float32)
    return w, b


def _self_attn_params(key, e):
    k1, k2 = jax.random.split(key, 2)
    wqkv, bqkv = _lin_params(k1, e, 3 * e)   # fused Q|K|V
    wo, bo = _lin_params(k2, e, e)
    return dict(wqkv=wqkv, bqkv=bqkv, wo=wo, bo=bo)


def _cross_attn_params(key, e):
    k1, k2, k3 = jax.random.split(key, 3)
    wq, bq = _lin_params(k1, e, e)
    wkv, bkv = _lin_params(k2, e, 2 * e)     # fused K|V
    wo, bo = _lin_params(k3, e, e)
    return dict(wq=wq, bq=bq, wkv=wkv, bkv=bkv, wo=wo, bo=bo)


def _ffn_params(key, e, hidden):
    k1, k2 = jax.random.split(key, 2)
    w1, b1 = _lin_params(k1, e, hidden)
    w2, b2 = _lin_params(k2, hidden, e)
    return dict(w1=w1, b1=b1, w2=w2, b2=b2)


def _ln_params(e):
    return jnp.ones((1, e), jnp.float32), jnp.zeros((1, e), jnp.float32)


def init_params(key, vocab, e, num_layers, ffn_dim):
    keys = jax.random.split(key, 2 * num_layers + 2)
    params = {"embedding": (0.02 * jax.random.normal(keys[0], (vocab, e))).astype(jnp.bfloat16)}

    enc_layers = []
    for i in range(num_layers):
        ka, kf = jax.random.split(keys[1 + i], 2)
        g1, b1 = _ln_params(e)
        g2, b2 = _ln_params(e)
        enc_layers.append(dict(self_attn=_self_attn_params(ka, e),
                               ffn=_ffn_params(kf, e, ffn_dim),
                               ln1_g=g1, ln1_b=b1, ln2_g=g2, ln2_b=b2))
    params["enc_layers"] = enc_layers

    dec_layers = []
    for i in range(num_layers):
        ka, kc, kf = jax.random.split(keys[1 + num_layers + i], 3)
        g1, b1 = _ln_params(e)
        g2, b2 = _ln_params(e)
        g3, b3 = _ln_params(e)
        dec_layers.append(dict(self_attn=_self_attn_params(ka, e),
                               cross_attn=_cross_attn_params(kc, e),
                               ffn=_ffn_params(kf, e, ffn_dim),
                               ln1_g=g1, ln1_b=b1, ln2_g=g2, ln2_b=b2,
                               ln3_g=g3, ln3_b=b3))
    params["dec_layers"] = dec_layers

    params["enc_norm_g"], params["enc_norm_b"] = _ln_params(e)
    params["dec_norm_g"], params["dec_norm_b"] = _ln_params(e)
    params["fc_w"], params["fc_b"] = _lin_params(keys[-1], e, vocab)
    return params


# --------------------------------- main ---------------------------------------

if __name__ == "__main__":
    # Small, consistent shapes (original: embed=2896, heads=8, layers=6, seq=512).
    # E chosen as a 128 multiple so the fused-QKV block-index path is exercised.
    SEQ = 8        # sequence_length
    BATCH = 2
    EMBED = 128    # embed_size (divisible by heads and by 128)
    HEADS = 4      # heads
    LAYERS = 2     # num_layers (encoder & decoder)
    FFN = 256      # dim_feedforward (nn.Transformer default 2048, scaled down)
    VOCAB = 16     # len(chars)

    key = jax.random.PRNGKey(0)
    k_params, k_ids = jax.random.split(key)
    params = init_params(k_params, VOCAB, EMBED, LAYERS, FFN)

    x = jax.random.randint(k_ids, (SEQ, BATCH), 0, VOCAB, dtype=jnp.int32)

    fwd = jax.jit(functools.partial(transformer_forward, heads=HEADS))
    logits = fwd(x, params)
    logits = jax.block_until_ready(logits)

    assert logits.shape == (SEQ, BATCH, VOCAB), logits.shape
    assert bool(jnp.all(jnp.isfinite(logits)))
    print("KERNEL_OK")
</pallas_src>

<mosaic_0001>
module attributes {stable_mosaic.version = 11 : i64} {
  func.func @_add_ln_kernel(%arg0: i32, %arg1: memref<16x128xbf16, #tpu.memory_space<vmem>>, %arg2: memref<16x128xbf16, #tpu.memory_space<vmem>>, %arg3: memref<1x128xf32, #tpu.memory_space<vmem>>, %arg4: memref<1x128xf32, #tpu.memory_space<vmem>>, %arg5: memref<16x128xbf16, #tpu.memory_space<vmem>>) attributes {dimension_semantics = [#tpu.dimension_semantics<parallel>], iteration_bounds = array<i64: 1>, scalar_prefetch = 0 : i64, scratch_operands = 0 : i64, tpu.core_type = #tpu.core_type<tc>, window_params = [{transform_indices = @transform_0, window_bounds = array<i64: 16, 128>}, {transform_indices = @transform_1, window_bounds = array<i64: 16, 128>}, {pipeline_mode = #tpu.pipeline_mode<synchronous>, transform_indices = @transform_2, window_bounds = array<i64: 1, 128>}, {pipeline_mode = #tpu.pipeline_mode<synchronous>, transform_indices = @transform_3, window_bounds = array<i64: 1, 128>}, {transform_indices = @transform_4, window_bounds = array<i64: 16, 128>}]} {
    %c0 = arith.constant 0 : index
    %c0_0 = arith.constant 0 : index
    %0 = vector.load %arg1[%c0, %c0_0] : memref<16x128xbf16, #tpu.memory_space<vmem>>, vector<16x128xbf16>
    %1 = arith.extf %0 : vector<16x128xbf16> to vector<16x128xf32>
    %c0_1 = arith.constant 0 : index
    %c0_2 = arith.constant 0 : index
    %2 = vector.load %arg2[%c0_1, %c0_2] : memref<16x128xbf16, #tpu.memory_space<vmem>>, vector<16x128xbf16>
    %3 = arith.extf %2 : vector<16x128xbf16> to vector<16x128xf32>
    %4 = arith.addf %1, %3 : vector<16x128xf32>
    %cst = arith.constant dense<0.000000e+00> : vector<16xf32>
    %5 = vector.multi_reduction <add>, %4, %cst [1] : vector<16x128xf32> to vector<16xf32>
    %6 = vector.shape_cast %5 : vector<16xf32> to vector<16x1xf32>
    %cst_3 = arith.constant 1.280000e+02 : f32
    %7 = vector.broadcast %cst_3 : f32 to vector<16x1xf32>
    %8 = arith.divf %6, %7 : vector<16x1xf32>
    %9 = vector.broadcast %8 : vector<16x1xf32> to vector<16x128xf32>
    %10 = arith.subf %4, %9 : vector<16x128xf32>
    %11 = arith.mulf %10, %10 : vector<16x128xf32>
    %cst_4 = arith.constant dense<0.000000e+00> : vector<16xf32>
    %12 = vector.multi_reduction <add>, %11, %cst_4 [1] : vector<16x128xf32> to vector<16xf32>
    %13 = vector.shape_cast %12 : vector<16xf32> to vector<16x1xf32>
    %cst_5 = arith.constant 1.280000e+02 : f32
    %14 = vector.broadcast %cst_5 : f32 to vector<16x1xf32>
    %15 = arith.divf %13, %14 : vector<16x1xf32>
    %cst_6 = arith.constant 9.99999974E-6 : f32
    %16 = vector.broadcast %cst_6 : f32 to vector<16x1xf32>
    %17 = arith.addf %15, %16 : vector<16x1xf32>
    %18 = math.rsqrt %17 : vector<16x1xf32>
    %19 = vector.broadcast %18 : vector<16x1xf32> to vector<16x128xf32>
    %20 = arith.mulf %10, %19 : vector<16x128xf32>
    %c0_7 = arith.constant 0 : index
    %c0_8 = arith.constant 0 : index
    %21 = vector.load %arg3[%c0_7, %c0_8] : memref<1x128xf32, #tpu.memory_space<vmem>>, vector<1x128xf32>
    %22 = vector.broadcast %21 : vector<1x128xf32> to vector<16x128xf32>
    %23 = arith.mulf %20, %22 : vector<16x128xf32>
    %c0_9 = arith.constant 0 : index
    %c0_10 = arith.constant 0 : index
    %24 = vector.load %arg4[%c0_9, %c0_10] : memref<1x128xf32, #tpu.memory_space<vmem>>, vector<1x128xf32>
    %25 = vector.broadcast %24 : vector<1x128xf32> to vector<16x128xf32>
    %26 = arith.addf %23, %25 : vector<16x128xf32>
    %27 = arith.truncf %26 : vector<16x128xf32> to vector<16x128xbf16>
    %c0_11 = arith.constant 0 : index
    %c0_12 = arith.constant 0 : index
    %28 = vector.load %arg5[%c0_11, %c0_12] : memref<16x128xbf16, #tpu.memory_space<vmem>>, vector<16x128xbf16>
    tpu.vector_store %arg5[%c0_11, %c0_12], %27 {strides = array<i32>} : memref<16x128xbf16, #tpu.memory_space<vmem>>, vector<16x128xbf16>,
    return
  }
  func.func @transform_0(%arg0: i32) -> (i32, i32) {
    %c0_i32 = arith.constant 0 : i32
    %c0_i32_0 = arith.constant 0 : i32
    return %arg0, %c0_i32 : i32, i32
  }
  func.func @transform_1(%arg0: i32) -> (i32, i32) {
    %c0_i32 = arith.constant 0 : i32
    %c0_i32_0 = arith.constant 0 : i32
    return %arg0, %c0_i32 : i32, i32
  }
  func.func @transform_2(%arg0: i32) -> (i32, i32) {
    %c0_i32 = arith.constant 0 : i32
    %c0_i32_0 = arith.constant 0 : i32
    %c0_i32_1 = arith.constant 0 : i32
    return %c0_i32, %c0_i32_0 : i32, i32
  }
  func.func @transform_3(%arg0: i32) -> (i32, i32) {
    %c0_i32 = arith.constant 0 : i32
    %c0_i32_0 = arith.constant 0 : i32
    %c0_i32_1 = arith.constant 0 : i32
    return %c0_i32, %c0_i32_0 : i32, i32
  }
  func.func @transform_4(%arg0: i32) -> (i32, i32) {
    %c0_i32 = arith.constant 0 : i32
    %c0_i32_0 = arith.constant 0 : i32
    return %arg0, %c0_i32 : i32, i32
  }
}

module attributes {stable_mosaic.version = 11 : i64} {
  func.func @_linear_kernel(%arg0: i32, %arg1: i32, %arg2: i32, %arg3: memref<16x128xbf16, #tpu.memory_space<vmem>>, %arg4: memref<128x384xbf16, #tpu.memory_space<vmem>>, %arg5: memref<1x384xf32, #tpu.memory_space<vmem>>, %arg6: memref<16x384xbf16, #tpu.memory_space<vmem>>, %arg7: memref<16x384xf32, #tpu.memory_space<vmem>>) attributes {dimension_semantics = [#tpu.dimension_semantics<parallel>, #tpu.dimension_semantics<parallel>, #tpu.dimension_semantics<arbitrary>], iteration_bounds = array<i64: 1, 1, 1>, scalar_prefetch = 0 : i64, scratch_operands = 1 : i64, tpu.core_type = #tpu.core_type<tc>, window_params = [{transform_indices = @transform_0, window_bounds = array<i64: 16, 128>}, {transform_indices = @transform_1, window_bounds = array<i64: 128, 384>}, {transform_indices = @transform_2, window_bounds = array<i64: 1, 384>}, {transform_indices = @transform_3, window_bounds = array<i64: 16, 384>}]} {
    %c0_i32 = arith.constant 0 : i32
    %0 = arith.cmpi eq, %arg2, %c0_i32 : i32
    %1 = arith.extui %0 : i1 to i32
    %c0_i32_0 = arith.constant 0 : i32
    %2 = arith.cmpi ne, %1, %c0_i32_0 : i32
    scf.if %2 {
      %cst_10 = arith.constant 0.000000e+00 : f32
      %12 = vector.broadcast %cst_10 : f32 to vector<16x384xf32>
      %c0_11 = arith.constant 0 : index
      %c0_12 = arith.constant 0 : index
      %13 = vector.load %arg7[%c0_11, %c0_12] : memref<16x384xf32, #tpu.memory_space<vmem>>, vector<16x384xf32>
      tpu.vector_store %arg7[%c0_11, %c0_12], %12 {strides = array<i32>} : memref<16x384xf32, #tpu.memory_space<vmem>>, vector<16x384xf32>,
    } else {
    }
    %c0 = arith.constant 0 : index
    %c0_1 = arith.constant 0 : index
    %3 = vector.load %arg7[%c0, %c0_1] : memref<16x384xf32, #tpu.memory_space<vmem>>, vector<16x384xf32>
    %c0_2 = arith.constant 0 : index
    %c0_3 = arith.constant 0 : index
    %4 = vector.load %arg3[%c0_2, %c0_3] : memref<16x128xbf16, #tpu.memory_space<vmem>>, vector<16x128xbf16>
    %c0_4 = arith.constant 0 : index
    %c0_5 = arith.constant 0 : index
    %5 = vector.load %arg4[%c0_4, %c0_5] : memref<128x384xbf16, #tpu.memory_space<vmem>>, vector<128x384xbf16>
    %cst = arith.constant dense<0.000000e+00> : vector<16x384xf32>
    %6 = tpu.matmul %4, %5, %cst {dimension_numbers = #tpu.dot_dimension_numbers<[1], [0], [0], [1], [0, 0, 1, 1], [], []>} : vector<16x128xbf16>, vector<128x384xbf16>, vector<16x384xf32> -> vector<16x384xf32>
    %7 = arith.addf %3, %6 : vector<16x384xf32>
    %c0_6 = arith.constant 0 : index
    %c0_7 = arith.constant 0 : index
    %8 = vector.load %arg7[%c0_6, %c0_7] : memref<16x384xf32, #tpu.memory_space<vmem>>, vector<16x384xf32>
    tpu.vector_store %arg7[%c0_6, %c0_7], %7 {strides = array<i32>} : memref<16x384xf32, #tpu.memory_space<vmem>>, vector<16x384xf32>,
    %c0_i32_8 = arith.constant 0 : i32
    %9 = arith.cmpi eq, %arg2, %c0_i32_8 : i32
    %10 = arith.extui %9 : i1 to i32
    %c0_i32_9 = arith.constant 0 : i32
    %11 = arith.cmpi ne, %10, %c0_i32_9 : i32
    scf.if %11 {
      %c0_10 = arith.constant 0 : index
      %c0_11 = arith.constant 0 : index
      %12 = vector.load %arg7[%c0_10, %c0_11] : memref<16x384xf32, #tpu.memory_space<vmem>>, vector<16x384xf32>
      %c0_12 = arith.constant 0 : index
      %c0_13 = arith.constant 0 : index
      %13 = vector.load %arg5[%c0_12, %c0_13] : memref<1x384xf32, #tpu.memory_space<vmem>>, vector<1x384xf32>
      %14 = vector.broadcast %13 : vector<1x384xf32> to vector<16x384xf32>
      %15 = arith.addf %12, %14 : vector<16x384xf32>
      %16 = arith.truncf %15 : vector<16x384xf32> to vector<16x384xbf16>
      %c0_14 = arith.constant 0 : index
      %c0_15 = arith.constant 0 : index
      %17 = vector.load %arg6[%c0_14, %c0_15] : memref<16x384xbf16, #tpu.memory_space<vmem>>, vector<16x384xbf16>
      tpu.vector_store %arg6[%c0_14, %c0_15], %16 {strides = array<i32>} : memref<16x384xbf16, #tpu.memory_space<vmem>>, vector<16x384xbf16>,
    } else {
    }
    return
  }
  func.func @transform_0(%arg0: i32, %arg1: i32, %arg2: i32) -> (i32, i32) {
    %c0_i32 = arith.constant 0 : i32
    return %arg0, %arg2 : i32, i32
  }
  func.func @transform_1(%arg0: i32, %arg1: i32, %arg2: i32) -> (i32, i32) {
    %c0_i32 = arith.constant 0 : i32
    return %arg2, %arg1 : i32, i32
  }
  func.func @transform_2(%arg0: i32, %arg1: i32, %arg2: i32) -> (i32, i32) {
    %c0_i32 = arith.constant 0 : i32
    %c0_i32_0 = arith.constant 0 : i32
    return %c0_i32, %arg1 : i32, i32
  }
  func.func @transform_3(%arg0: i32, %arg1: i32, %arg2: i32) -> (i32, i32) {
    %c0_i32 = arith.constant 0 : i32
    return %arg0, %arg1 : i32, i32
  }
}

module attributes {stable_mosaic.version = 11 : i64} {
  func.func @_linear_kernel(%arg0: i32, %arg1: i32, %arg2: i32, %arg3: memref<16x128xbf16, #tpu.memory_space<vmem>>, %arg4: memref<128x128xbf16, #tpu.memory_space<vmem>>, %arg5: memref<1x128xf32, #tpu.memory_space<vmem>>, %arg6: memref<16x128xbf16, #tpu.memory_space<vmem>>, %arg7: memref<16x128xf32, #tpu.memory_space<vmem>>) attributes {dimension_semantics = [#tpu.dimension_semantics<parallel>, #tpu.dimension_semantics<parallel>, #tpu.dimension_semantics<arbitrary>], iteration_bounds = array<i64: 1, 1, 1>, scalar_prefetch = 0 : i64, scratch_operands = 1 : i64, tpu.core_type = #tpu.core_type<tc>, window_params = [{transform_indices = @transform_0, window_bounds = array<i64: 16, 128>}, {transform_indices = @transform_1, window_bounds = array<i64: 128, 128>}, {transform_indices = @transform_2, window_bounds = array<i64: 1, 128>}, {transform_indices = @transform_3, window_bounds = array<i64: 16, 128>}]} {
    %c0_i32 = arith.constant 0 : i32
    %0 = arith.cmpi eq, %arg2, %c0_i32 : i32
    %1 = arith.extui %0 : i1 to i32
    %c0_i32_0 = arith.constant 0 : i32
    %2 = arith.cmpi ne, %1, %c0_i32_0 : i32
    scf.if %2 {
      %cst_10 = arith.constant 0.000000e+00 : f32
      %12 = vector.broadcast %cst_10 : f32 to vector<16x128xf32>
      %c0_11 = arith.constant 0 : index
      %c0_12 = arith.constant 0 : index
      %13 = vector.load %arg7[%c0_11, %c0_12] : memref<16x128xf32, #tpu.memory_space<vmem>>, vector<16x128xf32>
      tpu.vector_store %arg7[%c0_11, %c0_12], %12 {strides = array<i32>} : memref<16x128xf32, #tpu.memory_space<vmem>>, vector<16x128xf32>,
    } else {
    }
    %c0 = arith.constant 0 : index
    %c0_1 = arith.constant 0 : index
    %3 = vector.load %arg7[%c0, %c0_1] : memref<16x128xf32, #tpu.memory_space<vmem>>, vector<16x128xf32>
    %c0_2 = arith.constant 0 : index
    %c0_3 = arith.constant 0 : index
    %4 = vector.load %arg3[%c0_2, %c0_3] : memref<16x128xbf16, #tpu.memory_space<vmem>>, vector<16x128xbf16>
    %c0_4 = arith.constant 0 : index
    %c0_5 = arith.constant 0 : index
    %5 = vector.load %arg4[%c0_4, %c0_5] : memref<128x128xbf16, #tpu.memory_space<vmem>>, vector<128x128xbf16>
    %cst = arith.constant dense<0.000000e+00> : vector<16x128xf32>
    %6 = tpu.matmul %4, %5, %cst {dimension_numbers = #tpu.dot_dimension_numbers<[1], [0], [0], [1], [0, 0, 1, 1], [], []>} : vector<16x128xbf16>, vector<128x128xbf16>, vector<16x128xf32> -> vector<16x128xf32>
    %7 = arith.addf %3, %6 : vector<16x128xf32>
    %c0_6 = arith.constant 0 : index
    %c0_7 = arith.constant 0 : index
    %8 = vector.load %arg7[%c0_6, %c0_7] : memref<16x128xf32, #tpu.memory_space<vmem>>, vector<16x128xf32>
    tpu.vector_store %arg7[%c0_6, %c0_7], %7 {strides = array<i32>} : memref<16x128xf32, #tpu.memory_space<vmem>>, vector<16x128xf32>,
    %c0_i32_8 = arith.constant 0 : i32
    %9 = arith.cmpi eq, %arg2, %c0_i32_8 : i32
    %10 = arith.extui %9 : i1 to i32
    %c0_i32_9 = arith.constant 0 : i32
    %11 = arith.cmpi ne, %10, %c0_i32_9 : i32
    scf.if %11 {
      %c0_10 = arith.constant 0 : index
      %c0_11 = arith.constant 0 : index
      %12 = vector.load %arg7[%c0_10, %c0_11] : memref<16x128xf32, #tpu.memory_space<vmem>>, vector<16x128xf32>
      %c0_12 = arith.constant 0 : index
      %c0_13 = arith.constant 0 : index
      %13 = vector.load %arg5[%c0_12, %c0_13] : memref<1x128xf32, #tpu.memory_space<vmem>>, vector<1x128xf32>
      %14 = vector.broadcast %13 : vector<1x128xf32> to vector<16x128xf32>
      %15 = arith.addf %12, %14 : vector<16x128xf32>
      %16 = arith.truncf %15 : vector<16x128xf32> to vector<16x128xbf16>
      %c0_14 = arith.constant 0 : index
      %c0_15 = arith.constant 0 : index
      %17 = vector.load %arg6[%c0_14, %c0_15] : memref<16x128xbf16, #tpu.memory_space<vmem>>, vector<16x128xbf16>
      tpu.vector_store %arg6[%c0_14, %c0_15], %16 {strides = array<i32>} : memref<16x128xbf16, #tpu.memory_space<vmem>>, vector<16x128xbf16>,
    } else {
    }
    return
  }
  func.func @transform_0(%arg0: i32, %arg1: i32, %arg2: i32) -> (i32, i32) {
    %c0_i32 = arith.constant 0 : i32
    return %arg0, %arg2 : i32, i32
  }
  func.func @transform_1(%arg0: i32, %arg1: i32, %arg2: i32) -> (i32, i32) {
    %c0_i32 = arith.constant 0 : i32
    return %arg2, %arg1 : i32, i32
  }
  func.func @transform_2(%arg0: i32, %arg1: i32, %arg2: i32) -> (i32, i32) {
    %c0_i32 = arith.constant 0 : i32
    %c0_i32_0 = arith.constant 0 : i32
    return %c0_i32, %arg1 : i32, i32
  }
  func.func @transform_3(%arg0: i32, %arg1: i32, %arg2: i32) -> (i32, i32) {
    %c0_i32 = arith.constant 0 : i32
    return %arg0, %arg1 : i32, i32
  }
}

module attributes {stable_mosaic.version = 11 : i64} {
  func.func @_attn_kernel(%arg0: i32, %arg1: i32, %arg2: memref<1x8x128xbf16, #tpu.memory_space<vmem>>, %arg3: memref<1x8x128xbf16, #tpu.memory_space<vmem>>, %arg4: memref<1x8x128xbf16, #tpu.memory_space<vmem>>, %arg5: memref<1x8x128xbf16, #tpu.memory_space<vmem>>, %arg6: memref<4x8x1xf32, #tpu.memory_space<vmem>>, %arg7: memref<4x8x1xf32, #tpu.memory_space<vmem>>, %arg8: memref<4x8x32xf32, #tpu.memory_space<vmem>>) attributes {dimension_semantics = [#tpu.dimension_semantics<parallel>, #tpu.dimension_semantics<arbitrary>], iteration_bounds = array<i64: 2, 1>, scalar_prefetch = 0 : i64, scratch_operands = 3 : i64, tpu.core_type = #tpu.core_type<tc>, window_params = [{transform_indices = @transform_0, window_bounds = array<i64: 1, 8, 128>}, {transform_indices = @transform_1, window_bounds = array<i64: 1, 8, 128>}, {transform_indices = @transform_2, window_bounds = array<i64: 1, 8, 128>}, {transform_indices = @transform_3, window_bounds = array<i64: 1, 8, 128>}]} {
    %c0 = arith.constant 0 : index
    %c0_0 = arith.constant 0 : index
    %c0_1 = arith.constant 0 : index
    %0 = vector.load %arg2[%c0, %c0_0, %c0_1] : memref<1x8x128xbf16, #tpu.memory_space<vmem>>, vector<1x8x128xbf16>
    %1 = vector.shape_cast %0 : vector<1x8x128xbf16> to vector<8x128xbf16>
    %c0_2 = arith.constant 0 : index
    %c0_3 = arith.constant 0 : index
    %c0_4 = arith.constant 0 : index
    %2 = vector.load %arg3[%c0_2, %c0_3, %c0_4] : memref<1x8x128xbf16, #tpu.memory_space<vmem>>, vector<1x8x128xbf16>
    %3 = vector.shape_cast %2 : vector<1x8x128xbf16> to vector<8x128xbf16>
    %c0_5 = arith.constant 0 : index
    %c0_6 = arith.constant 0 : index
    %c0_7 = arith.constant 0 : index
    %4 = vector.load %arg4[%c0_5, %c0_6, %c0_7] : memref<1x8x128xbf16, #tpu.memory_space<vmem>>, vector<1x8x128xbf16>
    %5 = vector.shape_cast %4 : vector<1x8x128xbf16> to vector<8x128xbf16>
    %6 = vector.extract_strided_slice %1 {offsets = [0, 0], sizes = [8, 32], strides = [1, 1]} : vector<8x128xbf16> to vector<8x32xbf16>
    %7 = vector.extract_strided_slice %3 {offsets = [0, 0], sizes = [8, 32], strides = [1, 1]} : vector<8x128xbf16> to vector<8x32xbf16>
    %8 = vector.extract_strided_slice %5 {offsets = [0, 0], sizes = [8, 32], strides = [1, 1]} : vector<8x128xbf16> to vector<8x32xbf16>
    %cst = arith.constant dense<0.000000e+00> : vector<8x8xf32>
    %9 = tpu.matmul %6, %7, %cst {dimension_numbers = #tpu.dot_dimension_numbers<[1], [1], [0], [0], [0, 0, 1, 0], [], []>} : vector<8x32xbf16>, vector<8x32xbf16>, vector<8x8xf32> -> vector<8x8xf32>
    %cst_8 = arith.constant 0.176776692 : f32
    %10 = vector.broadcast %cst_8 : f32 to vector<8x8xf32>
    %11 = arith.mulf %9, %10 : vector<8x8xf32>
    %cst_9 = arith.constant dense<0xFF800000> : vector<8xf32>
    %12 = vector.multi_reduction <maximumf>, %11, %cst_9 [1] : vector<8x8xf32> to vector<8xf32>
    %13 = vector.shape_cast %12 : vector<8xf32> to vector<8x1xf32>
    %14 = vector.broadcast %13 : vector<8x1xf32> to vector<8x8xf32>
    %15 = arith.subf %11, %14 : vector<8x8xf32>
    %16 = math.exp %15 : vector<8x8xf32>
    %cst_10 = arith.constant dense<0.000000e+00> : vector<8xf32>
    %17 = vector.multi_reduction <add>, %16, %cst_10 [1] : vector<8x8xf32> to vector<8xf32>
    %18 = vector.shape_cast %17 : vector<8xf32> to vector<8x1xf32>
    %19 = arith.truncf %16 : vector<8x8xf32> to vector<8x8xbf16>
    %cst_11 = arith.constant dense<0.000000e+00> : vector<8x32xf32>
    %20 = tpu.matmul %19, %8, %cst_11 {dimension_numbers = #tpu.dot_dimension_numbers<[1], [0], [0], [1], [0, 0, 1, 1], [], []>} : vector<8x8xbf16>, vector<8x32xbf16>, vector<8x32xf32> -> vector<8x32xf32>
    %21 = tpu.reciprocal %18 {approx = true} : vector<8x1xf32> -> vector<8x1xf32>
    %22 = vector.broadcast %21 : vector<8x1xf32> to vector<8x32xf32>
    %23 = arith.mulf %20, %22 : vector<8x32xf32>
    %24 = vector.extract_strided_slice %1 {offsets = [0, 32], sizes = [8, 32], strides = [1, 1]} : vector<8x128xbf16> to vector<8x32xbf16>
    %25 = vector.extract_strided_slice %3 {offsets = [0, 32], sizes = [8, 32], strides = [1, 1]} : vector<8x128xbf16> to vector<8x32xbf16>
    %26 = vector.extract_strided_slice %5 {offsets = [0, 32], sizes = [8, 32], strides = [1, 1]} : vector<8x128xbf16> to vector<8x32xbf16>
    %cst_12 = arith.constant dense<0.000000e+00> : vector<8x8xf32>
    %27 = tpu.matmul %24, %25, %cst_12 {dimension_numbers = #tpu.dot_dimension_numbers<[1], [1], [0], [0], [0, 0, 1, 0], [], []>} : vector<8x32xbf16>, vector<8x32xbf16>, vector<8x8xf32> -> vector<8x8xf32>
    %cst_13 = arith.constant 0.176776692 : f32
    %28 = vector.broadcast %cst_13 : f32 to vector<8x8xf32>
    %29 = arith.mulf %27, %28 : vector<8x8xf32>
    %cst_14 = arith.constant dense<0xFF800000> : vector<8xf32>
    %30 = vector.multi_reduction <maximumf>, %29, %cst_14 [1] : vector<8x8xf32> to vector<8xf32>
    %31 = vector.shape_cast %30 : vector<8xf32> to vector<8x1xf32>
    %32 = vector.broadcast %31 : vector<8x1xf32> to vector<8x8xf32>
    %33 = arith.subf %29, %32 : vector<8x8xf32>
    %34 = math.exp %33 : vector<8x8xf32>
    %cst_15 = arith.constant dense<0.000000e+00> : vector<8xf32>
    %35 = vector.multi_reduction <add>, %34, %cst_15 [1] : vector<8x8xf32> to vector<8xf32>
    %36 = vector.shape_cast %35 : vector<8xf32> to vector<8x1xf32>
    %37 = arith.truncf %34 : vector<8x8xf32> to vector<8x8xbf16>
    %cst_16 = arith.constant dense<0.000000e+00> : vector<8x32xf32>
    %38 = tpu.matmul %37, %26, %cst_16 {dimension_numbers = #tpu.dot_dimension_numbers<[1], [0], [0], [1], [0, 0, 1, 1], [], []>} : vector<8x8xbf16>, vector<8x32xbf16>, vector<8x32xf32> -> vector<8x32xf32>
    %39 = tpu.reciprocal %36 {approx = true} : vector<8x1xf32> -> vector<8x1xf32>
    %40 = vector.broadcast %39 : vector<8x1xf32> to vector<8x32xf32>
    %41 = arith.mulf %38, %40 : vector<8x32xf32>
    %42 = vector.extract_strided_slice %1 {offsets = [0, 64], sizes = [8, 32], strides = [1, 1]} : vector<8x128xbf16> to vector<8x32xbf16>
    %43 = vector.extract_strided_slice %3 {offsets = [0, 64], sizes = [8, 32], strides = [1, 1]} : vector<8x128xbf16> to vector<8x32xbf16>
    %44 = vector.extract_strided_slice %5 {offsets = [0, 64], sizes = [8, 32], strides = [1, 1]} : vector<8x128xbf16> to vector<8x32xbf16>
    %cst_17 = arith.constant dense<0.000000e+00> : vector<8x8xf32>
    %45 = tpu.matmul %42, %43, %cst_17 {dimension_numbers = #tpu.dot_dimension_numbers<[1], [1], [0], [0], [0, 0, 1, 0], [], []>} : vector<8x32xbf16>, vector<8x32xbf16>, vector<8x8xf32> -> vector<8x8xf32>
    %cst_18 = arith.constant 0.176776692 : f32
    %46 = vector.broadcast %cst_18 : f32 to vector<8x8xf32>
    %47 = arith.mulf %45, %46 : vector<8x8xf32>
    %cst_19 = arith.constant dense<0xFF800000> : vector<8xf32>
    %48 = vector.multi_reduction <maximumf>, %47, %cst_19 [1] : vector<8x8xf32> to vector<8xf32>
    %49 = vector.shape_cast %48 : vector<8xf32> to vector<8x1xf32>
    %50 = vector.broadcast %49 : vector<8x1xf32> to vector<8x8xf32>
    %51 = arith.subf %47, %50 : vector<8x8xf32>
    %52 = math.exp %51 : vector<8x8xf32>
    %cst_20 = arith.constant dense<0.000000e+00> : vector<8xf32>
    %53 = vector.multi_reduction <add>, %52, %cst_20 [1] : vector<8x8xf32> to vector<8xf32>
    %54 = vector.shape_cast %53 : vector<8xf32> to vector<8x1xf32>
    %55 = arith.truncf %52 : vector<8x8xf32> to vector<8x8xbf16>
    %cst_21 = arith.constant dense<0.000000e+00> : vector<8x32xf32>
    %56 = tpu.matmul %55, %44, %cst_21 {dimension_numbers = #tpu.dot_dimension_numbers<[1], [0], [0], [1], [0, 0, 1, 1], [], []>} : vector<8x8xbf16>, vector<8x32xbf16>, vector<8x32xf32> -> vector<8x32xf32>
    %57 = tpu.reciprocal %54 {approx = true} : vector<8x1xf32> -> vector<8x1xf32>
    %58 = vector.broadcast %57 : vector<8x1xf32> to vector<8x32xf32>
    %59 = arith.mulf %56, %58 : vector<8x32xf32>
    %60 = vector.extract_strided_slice %1 {offsets = [0, 96], sizes = [8, 32], strides = [1, 1]} : vector<8x128xbf16> to vector<8x32xbf16>
    %61 = vector.extract_strided_slice %3 {offsets = [0, 96], sizes = [8, 32], strides = [1, 1]} : vector<8x128xbf16> to vector<8x32xbf16>
    %62 = vector.extract_strided_slice %5 {offsets = [0, 96], sizes = [8, 32], strides = [1, 1]} : vector<8x128xbf16> to vector<8x32xbf16>
    %cst_22 = arith.constant dense<0.000000e+00> : vector<8x8xf32>
    %63 = tpu.matmul %60, %61, %cst_22 {dimension_numbers = #tpu.dot_dimension_numbers<[1], [1], [0], [0], [0, 0, 1, 0], [], []>} : vector<8x32xbf16>, vector<8x32xbf16>, vector<8x8xf32> -> vector<8x8xf32>
    %cst_23 = arith.constant 0.176776692 : f32
    %64 = vector.broadcast %cst_23 : f32 to vector<8x8xf32>
    %65 = arith.mulf %63, %64 : vector<8x8xf32>
    %cst_24 = arith.constant dense<0xFF800000> : vector<8xf32>
    %66 = vector.multi_reduction <maximumf>, %65, %cst_24 [1] : vector<8x8xf32> to vector<8xf32>
    %67 = vector.shape_cast %66 : vector<8xf32> to vector<8x1xf32>
    %68 = vector.broadcast %67 : vector<8x1xf32> to vector<8x8xf32>
    %69 = arith.subf %65, %68 : vector<8x8xf32>
    %70 = math.exp %69 : vector<8x8xf32>
    %cst_25 = arith.constant dense<0.000000e+00> : vector<8xf32>
    %71 = vector.multi_reduction <add>, %70, %cst_25 [1] : vector<8x8xf32> to vector<8xf32>
    %72 = vector.shape_cast %71 : vector<8xf32> to vector<8x1xf32>
    %73 = arith.truncf %70 : vector<8x8xf32> to vector<8x8xbf16>
    %cst_26 = arith.constant dense<0.000000e+00> : vector<8x32xf32>
    %74 = tpu.matmul %73, %62, %cst_26 {dimension_numbers = #tpu.dot_dimension_numbers<[1], [0], [0], [1], [0, 0, 1, 1], [], []>} : vector<8x8xbf16>, vector<8x32xbf16>, vector<8x32xf32> -> vector<8x32xf32>
    %75 = tpu.reciprocal %72 {approx = true} : vector<8x1xf32> -> vector<8x1xf32>
    %76 = vector.broadcast %75 : vector<8x1xf32> to vector<8x32xf32>
    %77 = arith.mulf %74, %76 : vector<8x32xf32>
    %78 = tpu.concatenate %23, %41, %59, %77 in 1 : vector<8x32xf32>, vector<8x32xf32>, vector<8x32xf32>, vector<8x32xf32> -> vector<8x128xf32>
    %79 = arith.truncf %78 : vector<8x128xf32> to vector<8x128xbf16>
    %c0_27 = arith.constant 0 : index
    %c0_28 = arith.constant 0 : index
    %c0_29 = arith.constant 0 : index
    %80 = vector.load %arg5[%c0_27, %c0_28, %c0_29] : memref<1x8x128xbf16, #tpu.memory_space<vmem>>, vector<1x8x128xbf16>
    %81 = vector.shape_cast %80 : vector<1x8x128xbf16> to vector<8x128xbf16>
    %82 = vector.shape_cast %79 : vector<8x128xbf16> to vector<1x8x128xbf16>
    tpu.vector_store %arg5[%c0_27, %c0_28, %c0_29], %82 {strides = array<i32>} : memref<1x8x128xbf16, #tpu.memory_space<vmem>>, vector<1x8x128xbf16>,
    return
  }
  func.func @transform_0(%arg0: i32, %arg1: i32) -> (i32, i32, i32) {
    %c0_i32 = arith.constant 0 : i32
    %c0_i32_0 = arith.constant 0 : i32
    %c0_i32_1 = arith.constant 0 : i32
    return %arg0, %c0_i32, %c0_i32_0 : i32, i32, i32
  }
  func.func @transform_1(%arg0: i32, %arg1: i32) -> (i32, i32, i32) {
    %c1_i32 = arith.constant 1 : i32
    %c0_i32 = arith.constant 0 : i32
    return %arg0, %arg1, %c1_i32 : i32, i32, i32
  }
  func.func @transform_2(%arg0: i32, %arg1: i32) -> (i32, i32, i32) {
    %c2_i32 = arith.constant 2 : i32
    %c0_i32 = arith.constant 0 : i32
    return %arg0, %arg1, %c2_i32 : i32, i32, i32
  }
  func.func @transform_3(%arg0: i32, %arg1: i32) -> (i32, i32, i32) {
    %c0_i32 = arith.constant 0 : i32
    %c0_i32_0 = arith.constant 0 : i32
    %c0_i32_1 = arith.constant 0 : i32
    return %arg0, %c0_i32, %c0_i32_0 : i32, i32, i32
  }
}

module attributes {stable_mosaic.version = 11 : i64} {
  func.func @_ffn_kernel(%arg0: i32, %arg1: memref<16x128xbf16, #tpu.memory_space<vmem>>, %arg2: memref<128x256xbf16, #tpu.memory_space<vmem>>, %arg3: memref<1x256xf32, #tpu.memory_space<vmem>>, %arg4: memref<256x128xbf16, #tpu.memory_space<vmem>>, %arg5: memref<1x128xf32, #tpu.memory_space<vmem>>, %arg6: memref<16x128xbf16, #tpu.memory_space<vmem>>) attributes {dimension_semantics = [#tpu.dimension_semantics<parallel>], iteration_bounds = array<i64: 1>, scalar_prefetch = 0 : i64, scratch_operands = 0 : i64, tpu.core_type = #tpu.core_type<tc>, window_params = [{transform_indices = @transform_0, window_bounds = array<i64: 16, 128>}, {pipeline_mode = #tpu.pipeline_mode<synchronous>, transform_indices = @transform_1, window_bounds = array<i64: 128, 256>}, {pipeline_mode = #tpu.pipeline_mode<synchronous>, transform_indices = @transform_2, window_bounds = array<i64: 1, 256>}, {pipeline_mode = #tpu.pipeline_mode<synchronous>, transform_indices = @transform_3, window_bounds = array<i64: 256, 128>}, {pipeline_mode = #tpu.pipeline_mode<synchronous>, transform_indices = @transform_4, window_bounds = array<i64: 1, 128>}, {transform_indices = @transform_5, window_bounds = array<i64: 16, 128>}]} {
    %c0 = arith.constant 0 : index
    %c0_0 = arith.constant 0 : index
    %0 = vector.load %arg1[%c0, %c0_0] : memref<16x128xbf16, #tpu.memory_space<vmem>>, vector<16x128xbf16>
    %c0_1 = arith.constant 0 : index
    %c0_2 = arith.constant 0 : index
    %1 = vector.load %arg2[%c0_1, %c0_2] : memref<128x256xbf16, #tpu.memory_space<vmem>>, vector<128x256xbf16>
    %cst = arith.constant dense<0.000000e+00> : vector<16x256xf32>
    %2 = tpu.matmul %0, %1, %cst {dimension_numbers = #tpu.dot_dimension_numbers<[1], [0], [0], [1], [0, 0, 1, 1], [], []>} : vector<16x128xbf16>, vector<128x256xbf16>, vector<16x256xf32> -> vector<16x256xf32>
    %c0_3 = arith.constant 0 : index
    %c0_4 = arith.constant 0 : index
    %3 = vector.load %arg3[%c0_3, %c0_4] : memref<1x256xf32, #tpu.memory_space<vmem>>, vector<1x256xf32>
    %4 = vector.broadcast %3 : vector<1x256xf32> to vector<16x256xf32>
    %5 = arith.addf %2, %4 : vector<16x256xf32>
    %cst_5 = arith.constant 0.000000e+00 : f32
    %6 = vector.broadcast %cst_5 : f32 to vector<16x256xf32>
    %7 = arith.maximumf %5, %6 : vector<16x256xf32>
    %8 = arith.truncf %7 : vector<16x256xf32> to vector<16x256xbf16>
    %c0_6 = arith.constant 0 : index
    %c0_7 = arith.constant 0 : index
    %9 = vector.load %arg4[%c0_6, %c0_7] : memref<256x128xbf16, #tpu.memory_space<vmem>>, vector<256x128xbf16>
    %cst_8 = arith.constant dense<0.000000e+00> : vector<16x128xf32>
    %10 = tpu.matmul %8, %9, %cst_8 {dimension_numbers = #tpu.dot_dimension_numbers<[1], [0], [0], [1], [0, 0, 1, 1], [], []>} : vector<16x256xbf16>, vector<256x128xbf16>, vector<16x128xf32> -> vector<16x128xf32>
    %c0_9 = arith.constant 0 : index
    %c0_10 = arith.constant 0 : index
    %11 = vector.load %arg5[%c0_9, %c0_10] : memref<1x128xf32, #tpu.memory_space<vmem>>, vector<1x128xf32>
    %12 = vector.broadcast %11 : vector<1x128xf32> to vector<16x128xf32>
    %13 = arith.addf %10, %12 : vector<16x128xf32>
    %14 = arith.truncf %13 : vector<16x128xf32> to vector<16x128xbf16>
    %c0_11 = arith.constant 0 : index
    %c0_12 = arith.constant 0 : index
    %15 = vector.load %arg6[%c0_11, %c0_12] : memref<16x128xbf16, #tpu.memory_space<vmem>>, vector<16x128xbf16>
    tpu.vector_store %arg6[%c0_11, %c0_12], %14 {strides = array<i32>} : memref<16x128xbf16, #tpu.memory_space<vmem>>, vector<16x128xbf16>,
    return
  }
  func.func @transform_0(%arg0: i32) -> (i32, i32) {
    %c0_i32 = arith.constant 0 : i32
    %c0_i32_0 = arith.constant 0 : i32
    return %arg0, %c0_i32 : i32, i32
  }
  func.func @transform_1(%arg0: i32) -> (i32, i32) {
    %c0_i32 = arith.constant 0 : i32
    %c0_i32_0 = arith.constant 0 : i32
    %c0_i32_1 = arith.constant 0 : i32
    return %c0_i32, %c0_i32_0 : i32, i32
  }
  func.func @transform_2(%arg0: i32) -> (i32, i32) {
    %c0_i32 = arith.constant 0 : i32
    %c0_i32_0 = arith.constant 0 : i32
    %c0_i32_1 = arith.constant 0 : i32
    return %c0_i32, %c0_i32_0 : i32, i32
  }
  func.func @transform_3(%arg0: i32) -> (i32, i32) {
    %c0_i32 = arith.constant 0 : i32
    %c0_i32_0 = arith.constant 0 : i32
    %c0_i32_1 = arith.constant 0 : i32
    return %c0_i32, %c0_i32_0 : i32, i32
  }
  func.func @transform_4(%arg0: i32) -> (i32, i32) {
    %c0_i32 = arith.constant 0 : i32
    %c0_i32_0 = arith.constant 0 : i32
    %c0_i32_1 = arith.constant 0 : i32
    return %c0_i32, %c0_i32_0 : i32, i32
  }
  func.func @transform_5(%arg0: i32) -> (i32, i32) {
    %c0_i32 = arith.constant 0 : i32
    %c0_i32_0 = arith.constant 0 : i32
    return %arg0, %c0_i32 : i32, i32
  }
}

module attributes {stable_mosaic.version = 11 : i64} {
  func.func @_linear_kernel(%arg0: i32, %arg1: i32, %arg2: i32, %arg3: memref<16x128xbf16, #tpu.memory_space<vmem>>, %arg4: memref<128x256xbf16, #tpu.memory_space<vmem>>, %arg5: memref<1x256xf32, #tpu.memory_space<vmem>>, %arg6: memref<16x256xbf16, #tpu.memory_space<vmem>>, %arg7: memref<16x256xf32, #tpu.memory_space<vmem>>) attributes {dimension_semantics = [#tpu.dimension_semantics<parallel>, #tpu.dimension_semantics<parallel>, #tpu.dimension_semantics<arbitrary>], iteration_bounds = array<i64: 1, 1, 1>, scalar_prefetch = 0 : i64, scratch_operands = 1 : i64, tpu.core_type = #tpu.core_type<tc>, window_params = [{transform_indices = @transform_0, window_bounds = array<i64: 16, 128>}, {transform_indices = @transform_1, window_bounds = array<i64: 128, 256>}, {transform_indices = @transform_2, window_bounds = array<i64: 1, 256>}, {transform_indices = @transform_3, window_bounds = array<i64: 16, 256>}]} {
    %c0_i32 = arith.constant 0 : i32
    %0 = arith.cmpi eq, %arg2, %c0_i32 : i32
    %1 = arith.extui %0 : i1 to i32
    %c0_i32_0 = arith.constant 0 : i32
    %2 = arith.cmpi ne, %1, %c0_i32_0 : i32
    scf.if %2 {
      %cst_10 = arith.constant 0.000000e+00 : f32
      %12 = vector.broadcast %cst_10 : f32 to vector<16x256xf32>
      %c0_11 = arith.constant 0 : index
      %c0_12 = arith.constant 0 : index
      %13 = vector.load %arg7[%c0_11, %c0_12] : memref<16x256xf32, #tpu.memory_space<vmem>>, vector<16x256xf32>
      tpu.vector_store %arg7[%c0_11, %c0_12], %12 {strides = array<i32>} : memref<16x256xf32, #tpu.memory_space<vmem>>, vector<16x256xf32>,
    } else {
    }
    %c0 = arith.constant 0 : index
    %c0_1 = arith.constant 0 : index
    %3 = vector.load %arg7[%c0, %c0_1] : memref<16x256xf32, #tpu.memory_space<vmem>>, vector<16x256xf32>
    %c0_2 = arith.constant 0 : index
    %c0_3 = arith.constant 0 : index
    %4 = vector.load %arg3[%c0_2, %c0_3] : memref<16x128xbf16, #tpu.memory_space<vmem>>, vector<16x128xbf16>
    %c0_4 = arith.constant 0 : index
    %c0_5 = arith.constant 0 : index
    %5 = vector.load %arg4[%c0_4, %c0_5] : memref<128x256xbf16, #tpu.memory_space<vmem>>, vector<128x256xbf16>
    %cst = arith.constant dense<0.000000e+00> : vector<16x256xf32>
    %6 = tpu.matmul %4, %5, %cst {dimension_numbers = #tpu.dot_dimension_numbers<[1], [0], [0], [1], [0, 0, 1, 1], [], []>} : vector<16x128xbf16>, vector<128x256xbf16>, vector<16x256xf32> -> vector<16x256xf32>
    %7 = arith.addf %3, %6 : vector<16x256xf32>
    %c0_6 = arith.constant 0 : index
    %c0_7 = arith.constant 0 : index
    %8 = vector.load %arg7[%c0_6, %c0_7] : memref<16x256xf32, #tpu.memory_space<vmem>>, vector<16x256xf32>
    tpu.vector_store %arg7[%c0_6, %c0_7], %7 {strides = array<i32>} : memref<16x256xf32, #tpu.memory_space<vmem>>, vector<16x256xf32>,
    %c0_i32_8 = arith.constant 0 : i32
    %9 = arith.cmpi eq, %arg2, %c0_i32_8 : i32
    %10 = arith.extui %9 : i1 to i32
    %c0_i32_9 = arith.constant 0 : i32
    %11 = arith.cmpi ne, %10, %c0_i32_9 : i32
    scf.if %11 {
      %c0_10 = arith.constant 0 : index
      %c0_11 = arith.constant 0 : index
      %12 = vector.load %arg7[%c0_10, %c0_11] : memref<16x256xf32, #tpu.memory_space<vmem>>, vector<16x256xf32>
      %c0_12 = arith.constant 0 : index
      %c0_13 = arith.constant 0 : index
      %13 = vector.load %arg5[%c0_12, %c0_13] : memref<1x256xf32, #tpu.memory_space<vmem>>, vector<1x256xf32>
      %14 = vector.broadcast %13 : vector<1x256xf32> to vector<16x256xf32>
      %15 = arith.addf %12, %14 : vector<16x256xf32>
      %16 = arith.truncf %15 : vector<16x256xf32> to vector<16x256xbf16>
      %c0_14 = arith.constant 0 : index
      %c0_15 = arith.constant 0 : index
      %17 = vector.load %arg6[%c0_14, %c0_15] : memref<16x256xbf16, #tpu.memory_space<vmem>>, vector<16x256xbf16>
      tpu.vector_store %arg6[%c0_14, %c0_15], %16 {strides = array<i32>} : memref<16x256xbf16, #tpu.memory_space<vmem>>, vector<16x256xbf16>,
    } else {
    }
    return
  }
  func.func @transform_0(%arg0: i32, %arg1: i32, %arg2: i32) -> (i32, i32) {
    %c0_i32 = arith.constant 0 : i32
    return %arg0, %arg2 : i32, i32
  }
  func.func @transform_1(%arg0: i32, %arg1: i32, %arg2: i32) -> (i32, i32) {
    %c0_i32 = arith.constant 0 : i32
    return %arg2, %arg1 : i32, i32
  }
  func.func @transform_2(%arg0: i32, %arg1: i32, %arg2: i32) -> (i32, i32) {
    %c0_i32 = arith.constant 0 : i32
    %c0_i32_0 = arith.constant 0 : i32
    return %c0_i32, %arg1 : i32, i32
  }
  func.func @transform_3(%arg0: i32, %arg1: i32, %arg2: i32) -> (i32, i32) {
    %c0_i32 = arith.constant 0 : i32
    return %arg0, %arg1 : i32, i32
  }
}

module attributes {stable_mosaic.version = 11 : i64} {
  func.func @_ln_kernel(%arg0: i32, %arg1: memref<16x128xbf16, #tpu.memory_space<vmem>>, %arg2: memref<1x128xf32, #tpu.memory_space<vmem>>, %arg3: memref<1x128xf32, #tpu.memory_space<vmem>>, %arg4: memref<16x128xbf16, #tpu.memory_space<vmem>>) attributes {dimension_semantics = [#tpu.dimension_semantics<parallel>], iteration_bounds = array<i64: 1>, scalar_prefetch = 0 : i64, scratch_operands = 0 : i64, tpu.core_type = #tpu.core_type<tc>, window_params = [{transform_indices = @transform_0, window_bounds = array<i64: 16, 128>}, {pipeline_mode = #tpu.pipeline_mode<synchronous>, transform_indices = @transform_1, window_bounds = array<i64: 1, 128>}, {pipeline_mode = #tpu.pipeline_mode<synchronous>, transform_indices = @transform_2, window_bounds = array<i64: 1, 128>}, {transform_indices = @transform_3, window_bounds = array<i64: 16, 128>}]} {
    %c0 = arith.constant 0 : index
    %c0_0 = arith.constant 0 : index
    %0 = vector.load %arg1[%c0, %c0_0] : memref<16x128xbf16, #tpu.memory_space<vmem>>, vector<16x128xbf16>
    %1 = arith.extf %0 : vector<16x128xbf16> to vector<16x128xf32>
    %cst = arith.constant dense<0.000000e+00> : vector<16xf32>
    %2 = vector.multi_reduction <add>, %1, %cst [1] : vector<16x128xf32> to vector<16xf32>
    %3 = vector.shape_cast %2 : vector<16xf32> to vector<16x1xf32>
    %cst_1 = arith.constant 1.280000e+02 : f32
    %4 = vector.broadcast %cst_1 : f32 to vector<16x1xf32>
    %5 = arith.divf %3, %4 : vector<16x1xf32>
    %6 = vector.broadcast %5 : vector<16x1xf32> to vector<16x128xf32>
    %7 = arith.subf %1, %6 : vector<16x128xf32>
    %8 = arith.mulf %7, %7 : vector<16x128xf32>
    %cst_2 = arith.constant dense<0.000000e+00> : vector<16xf32>
    %9 = vector.multi_reduction <add>, %8, %cst_2 [1] : vector<16x128xf32> to vector<16xf32>
    %10 = vector.shape_cast %9 : vector<16xf32> to vector<16x1xf32>
    %cst_3 = arith.constant 1.280000e+02 : f32
    %11 = vector.broadcast %cst_3 : f32 to vector<16x1xf32>
    %12 = arith.divf %10, %11 : vector<16x1xf32>
    %cst_4 = arith.constant 9.99999974E-6 : f32
    %13 = vector.broadcast %cst_4 : f32 to vector<16x1xf32>
    %14 = arith.addf %12, %13 : vector<16x1xf32>
    %15 = math.rsqrt %14 : vector<16x1xf32>
    %16 = vector.broadcast %15 : vector<16x1xf32> to vector<16x128xf32>
    %17 = arith.mulf %7, %16 : vector<16x128xf32>
    %c0_5 = arith.constant 0 : index
    %c0_6 = arith.constant 0 : index
    %18 = vector.load %arg2[%c0_5, %c0_6] : memref<1x128xf32, #tpu.memory_space<vmem>>, vector<1x128xf32>
    %19 = vector.broadcast %18 : vector<1x128xf32> to vector<16x128xf32>
    %20 = arith.mulf %17, %19 : vector<16x128xf32>
    %c0_7 = arith.constant 0 : index
    %c0_8 = arith.constant 0 : index
    %21 = vector.load %arg3[%c0_7, %c0_8] : memref<1x128xf32, #tpu.memory_space<vmem>>, vector<1x128xf32>
    %22 = vector.broadcast %21 : vector<1x128xf32> to vector<16x128xf32>
    %23 = arith.addf %20, %22 : vector<16x128xf32>
    %24 = arith.truncf %23 : vector<16x128xf32> to vector<16x128xbf16>
    %c0_9 = arith.constant 0 : index
    %c0_10 = arith.constant 0 : index
    %25 = vector.load %arg4[%c0_9, %c0_10] : memref<16x128xbf16, #tpu.memory_space<vmem>>, vector<16x128xbf16>
    tpu.vector_store %arg4[%c0_9, %c0_10], %24 {strides = array<i32>} : memref<16x128xbf16, #tpu.memory_space<vmem>>, vector<16x128xbf16>,
    return
  }
  func.func @transform_0(%arg0: i32) -> (i32, i32) {
    %c0_i32 = arith.constant 0 : i32
    %c0_i32_0 = arith.constant 0 : i32
    return %arg0, %c0_i32 : i32, i32
  }
  func.func @transform_1(%arg0: i32) -> (i32, i32) {
    %c0_i32 = arith.constant 0 : i32
    %c0_i32_0 = arith.constant 0 : i32
    %c0_i32_1 = arith.constant 0 : i32
    return %c0_i32, %c0_i32_0 : i32, i32
  }
  func.func @transform_2(%arg0: i32) -> (i32, i32) {
    %c0_i32 = arith.constant 0 : i32
    %c0_i32_0 = arith.constant 0 : i32
    %c0_i32_1 = arith.constant 0 : i32
    return %c0_i32, %c0_i32_0 : i32, i32
  }
  func.func @transform_3(%arg0: i32) -> (i32, i32) {
    %c0_i32 = arith.constant 0 : i32
    %c0_i32_0 = arith.constant 0 : i32
    return %arg0, %c0_i32 : i32, i32
  }
}

module attributes {stable_mosaic.version = 11 : i64} {
  func.func @_attn_kernel(%arg0: i32, %arg1: i32, %arg2: memref<1x8x128xbf16, #tpu.memory_space<vmem>>, %arg3: memref<1x8x128xbf16, #tpu.memory_space<vmem>>, %arg4: memref<1x8x128xbf16, #tpu.memory_space<vmem>>, %arg5: memref<1x8x128xbf16, #tpu.memory_space<vmem>>, %arg6: memref<4x8x1xf32, #tpu.memory_space<vmem>>, %arg7: memref<4x8x1xf32, #tpu.memory_space<vmem>>, %arg8: memref<4x8x32xf32, #tpu.memory_space<vmem>>) attributes {dimension_semantics = [#tpu.dimension_semantics<parallel>, #tpu.dimension_semantics<arbitrary>], iteration_bounds = array<i64: 2, 1>, scalar_prefetch = 0 : i64, scratch_operands = 3 : i64, tpu.core_type = #tpu.core_type<tc>, window_params = [{transform_indices = @transform_0, window_bounds = array<i64: 1, 8, 128>}, {transform_indices = @transform_1, window_bounds = array<i64: 1, 8, 128>}, {transform_indices = @transform_2, window_bounds = array<i64: 1, 8, 128>}, {transform_indices = @transform_3, window_bounds = array<i64: 1, 8, 128>}]} {
    %c0 = arith.constant 0 : index
    %c0_0 = arith.constant 0 : index
    %c0_1 = arith.constant 0 : index
    %0 = vector.load %arg2[%c0, %c0_0, %c0_1] : memref<1x8x128xbf16, #tpu.memory_space<vmem>>, vector<1x8x128xbf16>
    %1 = vector.shape_cast %0 : vector<1x8x128xbf16> to vector<8x128xbf16>
    %c0_2 = arith.constant 0 : index
    %c0_3 = arith.constant 0 : index
    %c0_4 = arith.constant 0 : index
    %2 = vector.load %arg3[%c0_2, %c0_3, %c0_4] : memref<1x8x128xbf16, #tpu.memory_space<vmem>>, vector<1x8x128xbf16>
    %3 = vector.shape_cast %2 : vector<1x8x128xbf16> to vector<8x128xbf16>
    %c0_5 = arith.constant 0 : index
    %c0_6 = arith.constant 0 : index
    %c0_7 = arith.constant 0 : index
    %4 = vector.load %arg4[%c0_5, %c0_6, %c0_7] : memref<1x8x128xbf16, #tpu.memory_space<vmem>>, vector<1x8x128xbf16>
    %5 = vector.shape_cast %4 : vector<1x8x128xbf16> to vector<8x128xbf16>
    %6 = vector.extract_strided_slice %1 {offsets = [0, 0], sizes = [8, 32], strides = [1, 1]} : vector<8x128xbf16> to vector<8x32xbf16>
    %7 = vector.extract_strided_slice %3 {offsets = [0, 0], sizes = [8, 32], strides = [1, 1]} : vector<8x128xbf16> to vector<8x32xbf16>
    %8 = vector.extract_strided_slice %5 {offsets = [0, 0], sizes = [8, 32], strides = [1, 1]} : vector<8x128xbf16> to vector<8x32xbf16>
    %cst = arith.constant dense<0.000000e+00> : vector<8x8xf32>
    %9 = tpu.matmul %6, %7, %cst {dimension_numbers = #tpu.dot_dimension_numbers<[1], [1], [0], [0], [0, 0, 1, 0], [], []>} : vector<8x32xbf16>, vector<8x32xbf16>, vector<8x8xf32> -> vector<8x8xf32>
    %cst_8 = arith.constant 0.176776692 : f32
    %10 = vector.broadcast %cst_8 : f32 to vector<8x8xf32>
    %11 = arith.mulf %9, %10 : vector<8x8xf32>
    %cst_9 = arith.constant dense<0xFF800000> : vector<8xf32>
    %12 = vector.multi_reduction <maximumf>, %11, %cst_9 [1] : vector<8x8xf32> to vector<8xf32>
    %13 = vector.shape_cast %12 : vector<8xf32> to vector<8x1xf32>
    %14 = vector.broadcast %13 : vector<8x1xf32> to vector<8x8xf32>
    %15 = arith.subf %11, %14 : vector<8x8xf32>
    %16 = math.exp %15 : vector<8x8xf32>
    %cst_10 = arith.constant dense<0.000000e+00> : vector<8xf32>
    %17 = vector.multi_reduction <add>, %16, %cst_10 [1] : vector<8x8xf32> to vector<8xf32>
    %18 = vector.shape_cast %17 : vector<8xf32> to vector<8x1xf32>
    %19 = arith.truncf %16 : vector<8x8xf32> to vector<8x8xbf16>
    %cst_11 = arith.constant dense<0.000000e+00> : vector<8x32xf32>
    %20 = tpu.matmul %19, %8, %cst_11 {dimension_numbers = #tpu.dot_dimension_numbers<[1], [0], [0], [1], [0, 0, 1, 1], [], []>} : vector<8x8xbf16>, vector<8x32xbf16>, vector<8x32xf32> -> vector<8x32xf32>
    %21 = tpu.reciprocal %18 {approx = true} : vector<8x1xf32> -> vector<8x1xf32>
    %22 = vector.broadcast %21 : vector<8x1xf32> to vector<8x32xf32>
    %23 = arith.mulf %20, %22 : vector<8x32xf32>
    %24 = vector.extract_strided_slice %1 {offsets = [0, 32], sizes = [8, 32], strides = [1, 1]} : vector<8x128xbf16> to vector<8x32xbf16>
    %25 = vector.extract_strided_slice %3 {offsets = [0, 32], sizes = [8, 32], strides = [1, 1]} : vector<8x128xbf16> to vector<8x32xbf16>
    %26 = vector.extract_strided_slice %5 {offsets = [0, 32], sizes = [8, 32], strides = [1, 1]} : vector<8x128xbf16> to vector<8x32xbf16>
    %cst_12 = arith.constant dense<0.000000e+00> : vector<8x8xf32>
    %27 = tpu.matmul %24, %25, %cst_12 {dimension_numbers = #tpu.dot_dimension_numbers<[1], [1], [0], [0], [0, 0, 1, 0], [], []>} : vector<8x32xbf16>, vector<8x32xbf16>, vector<8x8xf32> -> vector<8x8xf32>
    %cst_13 = arith.constant 0.176776692 : f32
    %28 = vector.broadcast %cst_13 : f32 to vector<8x8xf32>
    %29 = arith.mulf %27, %28 : vector<8x8xf32>
    %cst_14 = arith.constant dense<0xFF800000> : vector<8xf32>
    %30 = vector.multi_reduction <maximumf>, %29, %cst_14 [1] : vector<8x8xf32> to vector<8xf32>
    %31 = vector.shape_cast %30 : vector<8xf32> to vector<8x1xf32>
    %32 = vector.broadcast %31 : vector<8x1xf32> to vector<8x8xf32>
    %33 = arith.subf %29, %32 : vector<8x8xf32>
    %34 = math.exp %33 : vector<8x8xf32>
    %cst_15 = arith.constant dense<0.000000e+00> : vector<8xf32>
    %35 = vector.multi_reduction <add>, %34, %cst_15 [1] : vector<8x8xf32> to vector<8xf32>
    %36 = vector.shape_cast %35 : vector<8xf32> to vector<8x1xf32>
    %37 = arith.truncf %34 : vector<8x8xf32> to vector<8x8xbf16>
    %cst_16 = arith.constant dense<0.000000e+00> : vector<8x32xf32>
    %38 = tpu.matmul %37, %26, %cst_16 {dimension_numbers = #tpu.dot_dimension_numbers<[1], [0], [0], [1], [0, 0, 1, 1], [], []>} : vector<8x8xbf16>, vector<8x32xbf16>, vector<8x32xf32> -> vector<8x32xf32>
    %39 = tpu.reciprocal %36 {approx = true} : vector<8x1xf32> -> vector<8x1xf32>
    %40 = vector.broadcast %39 : vector<8x1xf32> to vector<8x32xf32>
    %41 = arith.mulf %38, %40 : vector<8x32xf32>
    %42 = vector.extract_strided_slice %1 {offsets = [0, 64], sizes = [8, 32], strides = [1, 1]} : vector<8x128xbf16> to vector<8x32xbf16>
    %43 = vector.extract_strided_slice %3 {offsets = [0, 64], sizes = [8, 32], strides = [1, 1]} : vector<8x128xbf16> to vector<8x32xbf16>
    %44 = vector.extract_strided_slice %5 {offsets = [0, 64], sizes = [8, 32], strides = [1, 1]} : vector<8x128xbf16> to vector<8x32xbf16>
    %cst_17 = arith.constant dense<0.000000e+00> : vector<8x8xf32>
    %45 = tpu.matmul %42, %43, %cst_17 {dimension_numbers = #tpu.dot_dimension_numbers<[1], [1], [0], [0], [0, 0, 1, 0], [], []>} : vector<8x32xbf16>, vector<8x32xbf16>, vector<8x8xf32> -> vector<8x8xf32>
    %cst_18 = arith.constant 0.176776692 : f32
    %46 = vector.broadcast %cst_18 : f32 to vector<8x8xf32>
    %47 = arith.mulf %45, %46 : vector<8x8xf32>
    %cst_19 = arith.constant dense<0xFF800000> : vector<8xf32>
    %48 = vector.multi_reduction <maximumf>, %47, %cst_19 [1] : vector<8x8xf32> to vector<8xf32>
    %49 = vector.shape_cast %48 : vector<8xf32> to vector<8x1xf32>
    %50 = vector.broadcast %49 : vector<8x1xf32> to vector<8x8xf32>
    %51 = arith.subf %47, %50 : vector<8x8xf32>
    %52 = math.exp %51 : vector<8x8xf32>
    %cst_20 = arith.constant dense<0.000000e+00> : vector<8xf32>
    %53 = vector.multi_reduction <add>, %52, %cst_20 [1] : vector<8x8xf32> to vector<8xf32>
    %54 = vector.shape_cast %53 : vector<8xf32> to vector<8x1xf32>
    %55 = arith.truncf %52 : vector<8x8xf32> to vector<8x8xbf16>
    %cst_21 = arith.constant dense<0.000000e+00> : vector<8x32xf32>
    %56 = tpu.matmul %55, %44, %cst_21 {dimension_numbers = #tpu.dot_dimension_numbers<[1], [0], [0], [1], [0, 0, 1, 1], [], []>} : vector<8x8xbf16>, vector<8x32xbf16>, vector<8x32xf32> -> vector<8x32xf32>
    %57 = tpu.reciprocal %54 {approx = true} : vector<8x1xf32> -> vector<8x1xf32>
    %58 = vector.broadcast %57 : vector<8x1xf32> to vector<8x32xf32>
    %59 = arith.mulf %56, %58 : vector<8x32xf32>
    %60 = vector.extract_strided_slice %1 {offsets = [0, 96], sizes = [8, 32], strides = [1, 1]} : vector<8x128xbf16> to vector<8x32xbf16>
    %61 = vector.extract_strided_slice %3 {offsets = [0, 96], sizes = [8, 32], strides = [1, 1]} : vector<8x128xbf16> to vector<8x32xbf16>
    %62 = vector.extract_strided_slice %5 {offsets = [0, 96], sizes = [8, 32], strides = [1, 1]} : vector<8x128xbf16> to vector<8x32xbf16>
    %cst_22 = arith.constant dense<0.000000e+00> : vector<8x8xf32>
    %63 = tpu.matmul %60, %61, %cst_22 {dimension_numbers = #tpu.dot_dimension_numbers<[1], [1], [0], [0], [0, 0, 1, 0], [], []>} : vector<8x32xbf16>, vector<8x32xbf16>, vector<8x8xf32> -> vector<8x8xf32>
    %cst_23 = arith.constant 0.176776692 : f32
    %64 = vector.broadcast %cst_23 : f32 to vector<8x8xf32>
    %65 = arith.mulf %63, %64 : vector<8x8xf32>
    %cst_24 = arith.constant dense<0xFF800000> : vector<8xf32>
    %66 = vector.multi_reduction <maximumf>, %65, %cst_24 [1] : vector<8x8xf32> to vector<8xf32>
    %67 = vector.shape_cast %66 : vector<8xf32> to vector<8x1xf32>
    %68 = vector.broadcast %67 : vector<8x1xf32> to vector<8x8xf32>
    %69 = arith.subf %65, %68 : vector<8x8xf32>
    %70 = math.exp %69 : vector<8x8xf32>
    %cst_25 = arith.constant dense<0.000000e+00> : vector<8xf32>
    %71 = vector.multi_reduction <add>, %70, %cst_25 [1] : vector<8x8xf32> to vector<8xf32>
    %72 = vector.shape_cast %71 : vector<8xf32> to vector<8x1xf32>
    %73 = arith.truncf %70 : vector<8x8xf32> to vector<8x8xbf16>
    %cst_26 = arith.constant dense<0.000000e+00> : vector<8x32xf32>
    %74 = tpu.matmul %73, %62, %cst_26 {dimension_numbers = #tpu.dot_dimension_numbers<[1], [0], [0], [1], [0, 0, 1, 1], [], []>} : vector<8x8xbf16>, vector<8x32xbf16>, vector<8x32xf32> -> vector<8x32xf32>
    %75 = tpu.reciprocal %72 {approx = true} : vector<8x1xf32> -> vector<8x1xf32>
    %76 = vector.broadcast %75 : vector<8x1xf32> to vector<8x32xf32>
    %77 = arith.mulf %74, %76 : vector<8x32xf32>
    %78 = tpu.concatenate %23, %41, %59, %77 in 1 : vector<8x32xf32>, vector<8x32xf32>, vector<8x32xf32>, vector<8x32xf32> -> vector<8x128xf32>
    %79 = arith.truncf %78 : vector<8x128xf32> to vector<8x128xbf16>
    %c0_27 = arith.constant 0 : index
    %c0_28 = arith.constant 0 : index
    %c0_29 = arith.constant 0 : index
    %80 = vector.load %arg5[%c0_27, %c0_28, %c0_29] : memref<1x8x128xbf16, #tpu.memory_space<vmem>>, vector<1x8x128xbf16>
    %81 = vector.shape_cast %80 : vector<1x8x128xbf16> to vector<8x128xbf16>
    %82 = vector.shape_cast %79 : vector<8x128xbf16> to vector<1x8x128xbf16>
    tpu.vector_store %arg5[%c0_27, %c0_28, %c0_29], %82 {strides = array<i32>} : memref<1x8x128xbf16, #tpu.memory_space<vmem>>, vector<1x8x128xbf16>,
    return
  }
  func.func @transform_0(%arg0: i32, %arg1: i32) -> (i32, i32, i32) {
    %c0_i32 = arith.constant 0 : i32
    %c0_i32_0 = arith.constant 0 : i32
    %c0_i32_1 = arith.constant 0 : i32
    return %arg0, %c0_i32, %c0_i32_0 : i32, i32, i32
  }
  func.func @transform_1(%arg0: i32, %arg1: i32) -> (i32, i32, i32) {
    %c0_i32 = arith.constant 0 : i32
    %c0_i32_0 = arith.constant 0 : i32
    return %arg0, %arg1, %c0_i32 : i32, i32, i32
  }
  func.func @transform_2(%arg0: i32, %arg1: i32) -> (i32, i32, i32) {
    %c1_i32 = arith.constant 1 : i32
    %c0_i32 = arith.constant 0 : i32
    return %arg0, %arg1, %c1_i32 : i32, i32, i32
  }
  func.func @transform_3(%arg0: i32, %arg1: i32) -> (i32, i32, i32) {
    %c0_i32 = arith.constant 0 : i32
    %c0_i32_0 = arith.constant 0 : i32
    %c0_i32_1 = arith.constant 0 : i32
    return %arg0, %c0_i32, %c0_i32_0 : i32, i32, i32
  }
}

module attributes {stable_mosaic.version = 11 : i64} {
  func.func @_linear_kernel(%arg0: i32, %arg1: i32, %arg2: i32, %arg3: memref<16x128xbf16, #tpu.memory_space<vmem>>, %arg4: memref<128x16xbf16, #tpu.memory_space<vmem>>, %arg5: memref<1x16xf32, #tpu.memory_space<vmem>>, %arg6: memref<16x16xf32, #tpu.memory_space<vmem>>, %arg7: memref<16x16xf32, #tpu.memory_space<vmem>>) attributes {dimension_semantics = [#tpu.dimension_semantics<parallel>, #tpu.dimension_semantics<parallel>, #tpu.dimension_semantics<arbitrary>], iteration_bounds = array<i64: 1, 1, 1>, scalar_prefetch = 0 : i64, scratch_operands = 1 : i64, tpu.core_type = #tpu.core_type<tc>, window_params = [{transform_indices = @transform_0, window_bounds = array<i64: 16, 128>}, {transform_indices = @transform_1, window_bounds = array<i64: 128, 16>}, {transform_indices = @transform_2, window_bounds = array<i64: 1, 16>}, {transform_indices = @transform_3, window_bounds = array<i64: 16, 16>}]} {
    %c0_i32 = arith.constant 0 : i32
    %0 = arith.cmpi eq, %arg2, %c0_i32 : i32
    %1 = arith.extui %0 : i1 to i32
    %c0_i32_0 = arith.constant 0 : i32
    %2 = arith.cmpi ne, %1, %c0_i32_0 : i32
    scf.if %2 {
      %cst_10 = arith.constant 0.000000e+00 : f32
      %12 = vector.broadcast %cst_10 : f32 to vector<16x16xf32>
      %c0_11 = arith.constant 0 : index
      %c0_12 = arith.constant 0 : index
      %13 = vector.load %arg7[%c0_11, %c0_12] : memref<16x16xf32, #tpu.memory_space<vmem>>, vector<16x16xf32>
      tpu.vector_store %arg7[%c0_11, %c0_12], %12 {strides = array<i32>} : memref<16x16xf32, #tpu.memory_space<vmem>>, vector<16x16xf32>,
    } else {
    }
    %c0 = arith.constant 0 : index
    %c0_1 = arith.constant 0 : index
    %3 = vector.load %arg7[%c0, %c0_1] : memref<16x16xf32, #tpu.memory_space<vmem>>, vector<16x16xf32>
    %c0_2 = arith.constant 0 : index
    %c0_3 = arith.constant 0 : index
    %4 = vector.load %arg3[%c0_2, %c0_3] : memref<16x128xbf16, #tpu.memory_space<vmem>>, vector<16x128xbf16>
    %c0_4 = arith.constant 0 : index
    %c0_5 = arith.constant 0 : index
    %5 = vector.load %arg4[%c0_4, %c0_5] : memref<128x16xbf16, #tpu.memory_space<vmem>>, vector<128x16xbf16>
    %cst = arith.constant dense<0.000000e+00> : vector<16x16xf32>
    %6 = tpu.matmul %4, %5, %cst {dimension_numbers = #tpu.dot_dimension_numbers<[1], [0], [0], [1], [0, 0, 1, 1], [], []>} : vector<16x128xbf16>, vector<128x16xbf16>, vector<16x16xf32> -> vector<16x16xf32>
    %7 = arith.addf %3, %6 : vector<16x16xf32>
    %c0_6 = arith.constant 0 : index
    %c0_7 = arith.constant 0 : index
    %8 = vector.load %arg7[%c0_6, %c0_7] : memref<16x16xf32, #tpu.memory_space<vmem>>, vector<16x16xf32>
    tpu.vector_store %arg7[%c0_6, %c0_7], %7 {strides = array<i32>} : memref<16x16xf32, #tpu.memory_space<vmem>>, vector<16x16xf32>,
    %c0_i32_8 = arith.constant 0 : i32
    %9 = arith.cmpi eq, %arg2, %c0_i32_8 : i32
    %10 = arith.extui %9 : i1 to i32
    %c0_i32_9 = arith.constant 0 : i32
    %11 = arith.cmpi ne, %10, %c0_i32_9 : i32
    scf.if %11 {
      %c0_10 = arith.constant 0 : index
      %c0_11 = arith.constant 0 : index
      %12 = vector.load %arg7[%c0_10, %c0_11] : memref<16x16xf32, #tpu.memory_space<vmem>>, vector<16x16xf32>
      %c0_12 = arith.constant 0 : index
      %c0_13 = arith.constant 0 : index
      %13 = vector.load %arg5[%c0_12, %c0_13] : memref<1x16xf32, #tpu.memory_space<vmem>>, vector<1x16xf32>
      %14 = vector.broadcast %13 : vector<1x16xf32> to vector<16x16xf32>
      %15 = arith.addf %12, %14 : vector<16x16xf32>
      %c0_14 = arith.constant 0 : index
      %c0_15 = arith.constant 0 : index
      %16 = vector.load %arg6[%c0_14, %c0_15] : memref<16x16xf32, #tpu.memory_space<vmem>>, vector<16x16xf32>
      tpu.vector_store %arg6[%c0_14, %c0_15], %15 {strides = array<i32>} : memref<16x16xf32, #tpu.memory_space<vmem>>, vector<16x16xf32>,
    } else {
    }
    return
  }
  func.func @transform_0(%arg0: i32, %arg1: i32, %arg2: i32) -> (i32, i32) {
    %c0_i32 = arith.constant 0 : i32
    return %arg0, %arg2 : i32, i32
  }
  func.func @transform_1(%arg0: i32, %arg1: i32, %arg2: i32) -> (i32, i32) {
    %c0_i32 = arith.constant 0 : i32
    return %arg2, %arg1 : i32, i32
  }
  func.func @transform_2(%arg0: i32, %arg1: i32, %arg2: i32) -> (i32, i32) {
    %c0_i32 = arith.constant 0 : i32
    %c0_i32_0 = arith.constant 0 : i32
    return %c0_i32, %arg1 : i32, i32
  }
  func.func @transform_3(%arg0: i32, %arg1: i32, %arg2: i32) -> (i32, i32) {
    %c0_i32 = arith.constant 0 : i32
    return %arg0, %arg1 : i32, i32
  }
}

</mosaic_0001>

<bundles_post_ra>
// kernel: transformer_forward.40
= control target key start
LH: loop header
LB: loop body
LE: loop exit
PB: predicated region body
PF: predicated region fallthrough
CT: control target
= control target key end

     0   :  { %s145_s0 = inlined_call_operand.vmem [shape: bf16[16,128], index: 0, kind: input, shape index: {}]   ;;  %s146_s1 = inlined_call_operand.vmem [shape: bf16[16,128], index: 1, kind: input, shape index: {}]   ;;  %s147_s2 = inlined_call_operand.vmem [shape: f32[1,128], index: 2, kind: input, shape index: {}]   ;;  %s148_s3 = inlined_call_operand.vmem [shape: f32[1,128], index: 3, kind: input, shape index: {}]   ;;  %s149_s4 = inlined_call_operand.vmem [shape: bf16[16,128], index: 4, kind: output, shape index: {}]  }
   0x1   :  { %v89_v0 = vld [vmem:[%s145_s0] sm:$0xff]  }
   0x2   :  { %v93_v1 = vld [vmem:[%s146_s1] sm:$0xff]   ;;  %v90_v2 = vunpack.c.l.bf16 %v89_v0  ;;  %v91_v4 = vunpack.c.h.bf16 %v89_v0 }
   0x3   :  { %v94_v3 = vunpack.c.l.bf16 %v93_v1  ;;  %v95_v5 = vunpack.c.h.bf16 %v93_v1  ;;  %v82_v24 = vld [vmem:[%s147_s2] ss:$0 sm:$0xff] }
   0x4   :  { %v83_v28 = vld [vmem:[%s148_s3] ss:$0 sm:$0xff] }
   0x5   :  { %v25_v6 = vadd.f32 %v94_v3, %v90_v2  ;;  %v26_v7 = vadd.f32 %v95_v5, %v91_v4 }
   0x7   :  { %27 = vadd.xlane.f32.xlu0 %v25_v6 }
   0xb   :  { %29 = vadd.xlane.f32.xlu0 %v26_v7 }
  0x94   :  { %v28_v8 = vpop.xlane.xlu0 %27 }
  0x95   :  { %v32_v9 = vmul.f32 0.0078125, %v28_v8 }
  0x97   :  { %v34_v10 = vsub.f32 %v25_v6, %v32_v9 }
  0x98   :  { %v30_v11 = vpop.xlane.xlu0 %29 }
  0x99   :  { %v33_v12 = vmul.f32 0.0078125, %v30_v11  ;;  %v36_v13 = vmul.f32 %v34_v10, %v34_v10 }
  0x9b   :  { %v35_v14 = vsub.f32 %v26_v7, %v33_v12  ;;  %38 = vadd.xlane.f32.xlu1 %v36_v13 }
  0x9d   :  { %v37_v15 = vmul.f32 %v35_v14, %v35_v14 }
  0x9f   :  { %40 = vadd.xlane.f32.xlu1 %v37_v15 }
 0x128   :  { %v39_v16 = vpop.xlane.xlu1 %38 }
 0x129   :  { %v42_v17 = vmul.f32 0.0078125, %v39_v16 }
 0x12b   :  { %v44_v18 = vadd.f32 1e-05, %v42_v17 }
 0x12c   :  { %v41_v19 = vpop.xlane.xlu1 %40 }
 0x12d   :  { %101 = vrsqrt.f32 %v44_v18  ;;  %v43_v20 = vmul.f32 0.0078125, %v41_v19 }
 0x12f   :  { %v45_v21 = vadd.f32 1e-05, %v43_v20 }
 0x131   :  { %103 = vrsqrt.f32 %v45_v21 }
 0x137   :  { %v102_v22 = vpop.eup %101 }
 0x138   :  { %v48_v23 = vmul.f32 %v102_v22, %v34_v10 }
 0x13a   :  { %v57_v26 = vmul.f32 %v82_v24, %v48_v23 }
 0x13b   :  { %v104_v25 = vpop.eup %103 }
 0x13c   :  { %v49_v27 = vmul.f32 %v104_v25, %v35_v14  ;;  %v66_v30 = vadd.f32 %v83_v28, %v57_v26 }
 0x13e   :  { %v58_v29 = vmul.f32 %v82_v24, %v49_v27 }
 0x140   :  { %v67_v31 = vadd.f32 %v83_v28, %v58_v29 }
 0x142   :  { %v99_v32 = vpack.c.bf16 %v67_v31, %v66_v30 }
 0x144   :  { %100 = vst [vmem:[%s149_s4] sm:$0xff] %v99_v32  }

// kernel: transformer_forward.39
= control target key start
LH: loop header
LB: loop body
LE: loop exit
PB: predicated region body
PF: predicated region fallthrough
CT: control target
= control target key end

     0   :  { %v227_v0 = vmov 0.0   ;;  %vm228_vm0 = vmmov 0   ;;  %s282_s1 = inlined_call_operand.vmem [shape: bf16[128,128], index: 1, kind: input, shape index: {}]   ;;  %s283_s0 = inlined_call_operand.vmem [shape: bf16[16,128], index: 0, kind: input, shape index: {}]   ;;  %s284_s2 = inlined_call_operand.vmem [shape: f32[1,128], index: 2, kind: input, shape index: {}]   ;;  %s285_s3 = inlined_call_operand.vmem [shape: bf16[16,128], index: 3, kind: output, shape index: {}]  }
   0x1   :  { %196 = vmatprep.subr.bf16.mxu0 %v227_v0  ;;  %v218_v1 = vld [vmem:[%s282_s1] sm:$0xff]   ;;  %212 = vmatprep.mubr.msk.bf16.mxu0 %vm228_vm0, %v227_v0  ;;  %v219_v2 = vld [vmem:[%s282_s1 + $0x8] sm:$0xff]   ;;  %v220_v3 = vld [vmem:[%s282_s1 + $0x10] sm:$0xff]  }
   0x2   :  { %197 = vmatpush3.bf16.msra.mxu0 %v218_v1  ;;  %v221_v4 = vld [vmem:[%s282_s1 + $0x18] sm:$0xff]   ;;  %v222_v5 = vld [vmem:[%s282_s1 + $0x20] sm:$0xff]   ;;  %v223_v6 = vld [vmem:[%s282_s1 + $0x28] sm:$0xff]  }
   0x3   :  { %198 = vmatprep.subr.bf16.mxu0 %v227_v0  ;;  %v224_v7 = vld [vmem:[%s282_s1 + $0x30] sm:$0xff]   ;;  %v225_v8 = vld [vmem:[%s282_s1 + $0x38] sm:$0xff]   ;;  %v226_v9 = vld [vmem:[%s283_s0] sm:$0xff]  }
   0x4   :  { %v177_v11 = vld [vmem:[%s284_s2] ss:$0 sm:$0xff] }
   0x6   :  { %199 = vmatpush3.bf16.msra.mxu0 %v219_v2 }
   0x7   :  { %200 = vmatprep.subr.bf16.mxu0 %v227_v0 }
   0xa   :  { %201 = vmatpush3.bf16.msra.mxu0 %v220_v3 }
   0xb   :  { %202 = vmatprep.subr.bf16.mxu0 %v227_v0 }
   0xe   :  { %203 = vmatpush3.bf16.msra.mxu0 %v221_v4 }
   0xf   :  { %204 = vmatprep.subr.bf16.mxu0 %v227_v0 }
  0x12   :  { %205 = vmatpush3.bf16.msra.mxu0 %v222_v5 }
  0x13   :  { %206 = vmatprep.subr.bf16.mxu0 %v227_v0 }
  0x16   :  { %207 = vmatpush3.bf16.msra.mxu0 %v223_v6 }
  0x17   :  { %208 = vmatprep.subr.bf16.mxu0 %v227_v0 }
  0x1a   :  { %209 = vmatpush3.bf16.msra.mxu0 %v224_v7 }
  0x1b   :  { %210 = vmatprep.subr.bf16.mxu0 %v227_v0 }
  0x1e   :  { %211 = vmatpush3.bf16.msra.mxu0 %v225_v8 }
  0x21   :  { %213 = vmatmul.mubr.bf16.vlgmr.msra.gmra.mrb[0].mxu0 %v226_v9 }
  0xf4   :  { %v129_v10 = vpop.f32.mrb[0].mxu0 }
  0xf5   :  { %v214_v12 = vpop.f32.mrb[1].mxu0  ;;  %v152_v14 = vadd.f32 %v177_v11, %v129_v10 }
  0xf6   :  { %v132_v13 = vpop.f32.mrb[2].mxu0 }
  0xf7   :  { %v153_v15 = vadd.f32 %v177_v11, %v132_v13  ;;  %v215_v16 = vpop.f32.mrb[3].mxu0 }
  0xf9   :  { %v185_v17 = vpack.c.bf16 %v153_v15, %v152_v14 }
  0xfb   :  { %186 = vst [vmem:[%s285_s3] sm:$0xff] %v185_v17  }

// kernel: transformer_forward.37
= control target key start
LH: loop header
LB: loop body
LE: loop exit
PB: predicated region body
PF: predicated region fallthrough
CT: control target
= control target key end

     0   :  { %v453_v0 = vmov 0.0   ;;  %vm454_vm0 = vmmov 0   ;;  %v455_v3 = vmov 0   ;;  %v306_v27 = vlaneseq  ;;  %s566_s1 = inlined_call_operand.vmem [shape: bf16[128,384], index: 1, kind: input, shape index: {}]   ;;  %s567_s0 = inlined_call_operand.vmem [shape: bf16[16,128], index: 0, kind: input, shape index: {}]   ;;  %s568_s2 = inlined_call_operand.vmem [shape: f32[1,384], index: 2, kind: input, shape index: {}]   ;;  %s569_s3 = inlined_call_operand.vmem [shape: bf16[16,384], index: 3, kind: output, shape index: {}]  }
   0x1   :  { %397 = vmatprep.subr.bf16.mxu1 %v453_v0  ;;  %v420_v1 = vld [vmem:[%s566_s1 + $0x4] ss:$12 sps:$4 sm:$0xff]   ;;  %413 = vmatprep.mubr.msk.bf16.mxu1 %vm454_vm0, %v453_v0  ;;  %v422_v2 = vld [vmem:[%s566_s1 + $0x8] ss:$12 sps:$4 sm:$0xff]   ;;  %v423_v4 = vld [vmem:[%s566_s1] ss:$12 sps:$4 sm:$0xff]  }
   0x2   :  { %231 = vmatprep.mubr.bf16.mxu0 %v455_v3  ;;  %199 = vmatprep.subr.bf16.mxu0 %v420_v1  ;;  %v424_v5 = vld [vmem:[%s566_s1 + $0x1c] ss:$12 sps:$4 sm:$0xff]   ;;  %v426_v6 = vld [vmem:[%s566_s1 + $0x20] ss:$12 sps:$4 sm:$0xff]   ;;  %v427_v7 = vld [vmem:[%s566_s1 + $0x18] ss:$12 sps:$4 sm:$0xff]  }
   0x3   :  { %398 = vmatpush3.bf16.msra.mxu1 %v422_v2  ;;  %200 = vmatpush1.bf16.msra.mxu0 %v423_v4  ;;  %v428_v8 = vld [vmem:[%s566_s1 + $0x34] ss:$12 sps:$4 sm:$0xff]   ;;  %v430_v9 = vld [vmem:[%s566_s1 + $0x38] ss:$12 sps:$4 sm:$0xff]   ;;  %v431_v10 = vld [vmem:[%s566_s1 + $0x30] ss:$12 sps:$4 sm:$0xff]  }
   0x4   :  { %399 = vmatprep.subr.bf16.mxu1 %v453_v0  ;;  %201 = vmatprep.subr.bf16.mxu0 %v424_v5  ;;  %v432_v11 = vld [vmem:[%s566_s1 + $0x4c] ss:$12 sps:$4 sm:$0xff]   ;;  %v434_v12 = vld [vmem:[%s566_s1 + $0x50] ss:$12 sps:$4 sm:$0xff]   ;;  %v435_v13 = vld [vmem:[%s566_s1 + $0x48] ss:$12 sps:$4 sm:$0xff]  }
   0x5   :  { %v436_v14 = vld [vmem:[%s566_s1 + $0x64] ss:$12 sps:$4 sm:$0xff]   ;;  %v438_v15 = vld [vmem:[%s566_s1 + $0x68] ss:$12 sps:$4 sm:$0xff]   ;;  %v439_v16 = vld [vmem:[%s566_s1 + $0x60] ss:$12 sps:$4 sm:$0xff]  }
   0x6   :  { %v440_v17 = vld [vmem:[%s566_s1 + $0x7c] ss:$12 sps:$4 sm:$0xff]   ;;  %v442_v18 = vld [vmem:[%s566_s1 + $0x80] ss:$12 sps:$4 sm:$0xff]   ;;  %v443_v19 = vld [vmem:[%s566_s1 + $0x78] ss:$12 sps:$4 sm:$0xff]  }
   0x7   :  { %400 = vmatpush3.bf16.msra.mxu1 %v426_v6  ;;  %202 = vmatpush1.bf16.msra.mxu0 %v427_v7  ;;  %v444_v20 = vld [vmem:[%s566_s1 + $0x94] ss:$12 sps:$4 sm:$0xff]   ;;  %v446_v21 = vld [vmem:[%s566_s1 + $0x98] ss:$12 sps:$4 sm:$0xff]   ;;  %v447_v22 = vld [vmem:[%s566_s1 + $0x90] ss:$12 sps:$4 sm:$0xff]  }
   0x8   :  { %401 = vmatprep.subr.bf16.mxu1 %v453_v0  ;;  %203 = vmatprep.subr.bf16.mxu0 %v428_v8  ;;  %v448_v23 = vld [vmem:[%s566_s1 + $0xac] ss:$12 sps:$4 sm:$0xff]   ;;  %v450_v24 = vld [vmem:[%s566_s1 + $0xb0] ss:$12 sps:$4 sm:$0xff]   ;;  %v451_v25 = vld [vmem:[%s566_s1 + $0xa8] ss:$12 sps:$4 sm:$0xff]  }
   0x9   :  { %v452_v26 = vld [vmem:[%s567_s0] sm:$0xff]   ;;  %v307_v28 = vshrl.u32 %v306_v27, 7 }
   0xa   :  { %v304_v30 = vld [vmem:[%s568_s2] sm:$0x7] }
   0xb   :  { %402 = vmatpush3.bf16.msra.mxu1 %v430_v9  ;;  %204 = vmatpush1.bf16.msra.mxu0 %v431_v10  ;;  %v316_v29 = vsub.s32 2, %v307_v28  ;;  %v308_v31 = vsub.s32 0, %v307_v28  ;;  %v312_v32 = vsub.s32 1, %v307_v28 }
   0xc   :  { %403 = vmatprep.subr.bf16.mxu1 %v453_v0  ;;  %205 = vmatprep.subr.bf16.mxu0 %v432_v11 }
   0xd   :  { %v317_v33 = vrot.slane %v304_v30, %v316_v29  ;;  %v309_v34 = vrot.slane %v304_v30, %v308_v31  ;;  %v313_v35 = vrot.slane %v304_v30, %v312_v32 }
   0xf   :  { %404 = vmatpush3.bf16.msra.mxu1 %v434_v12  ;;  %206 = vmatpush1.bf16.msra.mxu0 %v435_v13 }
  0x10   :  { %405 = vmatprep.subr.bf16.mxu1 %v453_v0  ;;  %207 = vmatprep.subr.bf16.mxu0 %v436_v14 }
  0x13   :  { %406 = vmatpush3.bf16.msra.mxu1 %v438_v15  ;;  %208 = vmatpush1.bf16.msra.mxu0 %v439_v16 }
  0x14   :  { %407 = vmatprep.subr.bf16.mxu1 %v453_v0  ;;  %209 = vmatprep.subr.bf16.mxu0 %v440_v17 }
  0x17   :  { %408 = vmatpush3.bf16.msra.mxu1 %v442_v18  ;;  %210 = vmatpush1.bf16.msra.mxu0 %v443_v19 }
  0x18   :  { %409 = vmatprep.subr.bf16.mxu1 %v453_v0  ;;  %211 = vmatprep.subr.bf16.mxu0 %v444_v20 }
  0x1b   :  { %410 = vmatpush3.bf16.msra.mxu1 %v446_v21  ;;  %212 = vmatpush1.bf16.msra.mxu0 %v447_v22 }
  0x1c   :  { %411 = vmatprep.subr.bf16.mxu1 %v453_v0  ;;  %213 = vmatprep.subr.bf16.mxu0 %v448_v23 }
  0x1f   :  { %412 = vmatpush3.bf16.msra.mxu1 %v450_v24  ;;  %214 = vmatpush1.bf16.msra.mxu0 %v451_v25 }
  0x22   :  { %414 = vmatmul.mubr.bf16.vlgmr.msra.gmra.mrb[0].mxu1 %v452_v26  ;;  %232 = vmatmul.mubr.bf16.vlgmr.msra.gmra.mrb[0].mxu0 %v452_v26 }
  0xf5   :  { %v276_v36 = vpop.f32.mrb[0].mxu1  ;;  %v233_v38 = vpop.f32.mrb[0].mxu0 }
  0xf6   :  { %v323_v37 = vadd.f32 %v317_v33, %v276_v36  ;;  %v415_v39 = vpop.f32.mrb[1].mxu1  ;;  %v321_v40 = vadd.f32 %v309_v34, %v233_v38  ;;  %v235_v41 = vpop.f32.mrb[1].mxu0 }
  0xf7   :  { %v279_v42 = vpop.f32.mrb[2].mxu1  ;;  %v322_v44 = vadd.f32 %v313_v35, %v235_v41  ;;  %v237_v46 = vpop.f32.mrb[2].mxu0 }
  0xf8   :  { %v385_v43 = vpack.c.bf16 %v323_v37, %v323_v37  ;;  %v326_v45 = vadd.f32 %v317_v33, %v279_v42  ;;  %v416_v47 = vpop.f32.mrb[3].mxu1  ;;  %v324_v48 = vadd.f32 %v309_v34, %v237_v46  ;;  %v239_v49 = vpop.f32.mrb[3].mxu0 }
  0xf9   :  { %v384_v50 = vpack.c.bf16 %v322_v44, %v321_v40  ;;  %v325_v52 = vadd.f32 %v313_v35, %v239_v49 }
  0xfa   :  { %348 = vst [vmem:[%s569_s3 + $0x8] sm:$0xf] %v385_v43  ;;  %v387_v51 = vpack.c.bf16 %v326_v45, %v326_v45 }
  0xfb   :  { %347 = vst [vmem:[%s569_s3] sm:$0xff] %v384_v50  ;;  %v386_v53 = vpack.c.bf16 %v325_v52, %v324_v48 }
  0xfc   :  { %350 = vst [vmem:[%s569_s3 + $0x14] sm:$0xf] %v387_v51 }
  0xfd   :  { %349 = vst [vmem:[%s569_s3 + $0xc] sm:$0xff] %v386_v53 }

// kernel: transformer_forward.38
= control target key start
LH: loop header
LB: loop body
LE: loop exit
PB: predicated region body
PF: predicated region fallthrough
CT: control target
= control target key end

     0   :  { %s1023_s12 = smov 0   ;;  %s1025_s13 = smov 0   ;;  %s1140_s0 = inlined_call_operand.vmem [shape: bf16[2,8,384], index: 0, kind: input, shape index: {}, may-alias: {0,1,2}]   ;;  %s1141_s1 = inlined_call_operand.vmem [shape: bf16[2,8,384], index: 1, kind: input, shape index: {}, may-alias: {0,1,2}]   ;;  %s1142_s2 = inlined_call_operand.vmem [shape: bf16[2,8,384], index: 2, kind: input, shape index: {}, may-alias: {0,1,2}]   ;;  %s1143_s3 = inlined_call_operand.vmem [shape: bf16[2,8,128], index: 3, kind: output, shape index: {}]  }
   0x1   :  { %s1027_s14 = smov 0  }
   0x2 LB: > { %s25_s15 = sadd.s32 1, %s992_s13  ;;  %p841_p0 = scmp.ge.s32.totalorder %s996_s14, 1  ;;  %s996_s14 = sphi %s1027_s14, %s13_s14   ;;  %s992_s13 = sphi %s1025_s13, %s1145_s13   ;;  %s988_s12 = sphi %s1023_s12, %s1144_s12  }
   0x3   : > { %p27_p1 = scmp.ge.s32.totalorder %s25_s15, 2  ;;  %p183_p2 = scmp.lt.s32.totalorder %s996_s14, 3 }
   0x5   : > { %s1147_s15 = smov (%p27_p1, %s25_s15), 0  ;;  %p184_p3 = pnand %p841_p0, %p183_p2 }
   0x6   : > { %p226_p4 = scmp.lt.s32.totalorder (!%p184_p3), %s988_s12, 1  ;;  %v998_v0 = vmov (!%p184_p3), 0.0   ;;  %vm999_vm0 = vmmov (!%p184_p3), 0   ;;  %vm259_vm1 = vcmask (!%p184_p3), 261120   ;;  %s1000_s23 = smov (!%p184_p3), 96   ;;  %vm307_vm2 = vcmask (!%p184_p3), 64512  }
   0x7   : > { %187 = sbr.rel (%p184_p3) target bundleno = 1169 (0x491), region = 32  ;;  %877 = vmatprep.subr.bf16.mxu0 (!%p184_p3), %v998_v0  ;;  %879 = vmatprep.mubr.msk.bf16.mxu0 (!%p184_p3), %vm999_vm0, %v998_v0  ;;  %s1001_s24 = smov (!%p184_p3), 64   ;;  %vm321_vm3 = vcmask (!%p184_p3), 1043456   ;;  %vm722_vm4 = vcmask (!%p184_p3), 523264   ;;  %vm724_vm5 = vcmask (!%p184_p3), 785408  }
   0x8   : > { %883 = vmatprep.subr.bf16.mxu1 (!%p184_p3), %v998_v0  ;;  %885 = vmatprep.mubr.msk.bf16.mxu1 (!%p184_p3), %vm999_vm0, %v998_v0  ;;  %s1002_s25 = smov (!%p184_p3), 32  }
   0xe   : > { %s1149_s12 = smov (!%p226_p4, %s988_s12), 1 }
   0xf   : > { %s1050_s16 = smul.u32 12, %s1149_s12  ;;  %s845_s29 = sshll.u32 %s1149_s12, 2 }
  0x10   : > { %s254_s5 = scalar_lea.vmem %s1143_s3, %s845_s29 }
  0x11   : > { %s783_s19 = scalar_lea.vmem %s1141_s1, %s1050_s16  ;;  %s230_s22 = scalar_lea.vmem %s1140_s0, %s1050_s16 }
  0x12   : > { %v846_v1 = vld [vmem:[%s783_s19 + $0x4] sm:$0xf]  ;;  %v256_v3 = vld [vmem:[%s230_s22] sm:$0xf]  ;;  %s789_s28 = scalar_lea.vmem %s1142_s2, %s1050_s16 }
  0x13   : > { %v264_v2 = vsel %vm259_vm1, %v846_v1, 0  ;;  %v850_v4 = vcombine.low %v256_v3, %v256_v3  ;;  %v851_v5 = vcombine.low %v846_v1, %v846_v1  ;;  %v847_v12 = vld [vmem:[%s789_s28 + $0x8] sm:$0xf] }
  0x14   : > { %878 = vmatpush3.bf16.xpose.msra.mxu0 %v264_v2  ;;  %v323_v13 = vsel %vm321_vm3, %v847_v12, 0  ;;  %v853_v45 = vcombine.low %v847_v12, %v847_v12 }
  0x15   : > { %895 = vmatprep.subr.bf16.mxu0 %v998_v0  ;;  %370 = vrot.lane.b32.xlu1 %v850_v4, %s1000_s23 }
  0x16   : > { %884 = vmatpush3.bf16.msra.mxu1 %v323_v13 }
  0x17   : > { %889 = vmatprep.subr.bf16.mxu1 %v998_v0 }
  0x19   : > { %489 = vrot.lane.b32.xlu1 %v851_v5, %s1001_s24 }
  0x1b   : > { %880 = vmatmul.mubr.msk.bf16.vlgmr.msra.gmra.mrb[0].mxu0 %vm259_vm1, %v256_v3 }
  0x1c   : > { %897 = vmatprep.mubr.msk.bf16.mxu0 %vm999_vm0, %v998_v0 }
  0x1d   : > { %487 = vrot.lane.b32.xlu1 %v850_v4, %s1001_s24 }
  0x21   : > { %600 = vrot.lane.b32.xlu1 %v851_v5, %s1002_s25 }
  0x25   : > { %598 = vrot.lane.b32.xlu1 %v850_v4, %s1002_s25 }
  0x87   : > { %v371_v19 = vpop.permute.xlu1 %370 }
  0x8b   : > { %v490_v22 = vpop.permute.xlu1 %489 }
  0x8c   : > { %v495_v23 = vsel %vm259_vm1, %v490_v22, 0 }
  0x8f   : > { %v488_v24 = vpop.permute.xlu1 %487 }
  0x93   : > { %v601_v25 = vpop.permute.xlu1 %600 }
  0x94   : > { %v606_v26 = vsel %vm259_vm1, %v601_v25, 0 }
  0x97   : > { %v599_v27 = vpop.permute.xlu1 %598 }
  0xee   : > { %v300_v6 = vpop.f32.mrb[0].mxu0 }
  0xef   : > { %v306_v7 = vmul.f32 0.17677669, %v300_v6  ;;  %v881_v8 = vpop.f32.mrb[1].mxu0 }
  0xf0   : > { %v303_v9 = vpop.f32.mrb[2].mxu0 }
  0xf1   : > { %v882_v10 = vpop.f32.mrb[3].mxu0  ;;  %v308_v11 = vsel %vm307_vm2, %v306_v7, -inf }
  0xf2   : > { %309 = vmax.xlane.f32.xlu0 %v308_v11 }
 0x108   : > { %375 = vrot.lane.b32.xlu0 %v851_v5, %s1000_s23 }
 0x17f   : > { %v310_v14 = vpop.xlane.xlu0 %309 }
 0x180   : > { %v311_v15 = vsub.f32 %v306_v7, %v310_v14 }
 0x182   : > { %v312_v16 = vmul.f32 1.442695, %v311_v15 }
 0x183   : > { %v376_v17 = vpop.permute.xlu0 %375 }
 0x184   : > { %958 = vpow2.f32 %v312_v16  ;;  %v381_v20 = vsel %vm259_vm1, %v376_v17, 0 }
 0x18e   : > { %v1078_v18 = vpop.eup %958 }
 0x18f   : > { %v317_v21 = vpack.c.bf16 %v1078_v18, %v1078_v18  ;;  %v314_v12 = vsel %vm307_vm2, %v1078_v18, 0.0 }
 0x191   : > { %886 = vmatmul.mubr.msk.bf16.vlgmr.msra.gmra.mrb[0].mxu1 %vm307_vm2, %v317_v21 }
 0x192   : > { %890 = vmatpush3.bf16.xpose.msra.mxu1 %v381_v20  ;;  %891 = vmatprep.mubr.msk.bf16.mxu1 %vm999_vm0, %v998_v0 }
 0x193   : > { %901 = vmatprep.subr.bf16.mxu1 %v998_v0 }
 0x199   : > { %892 = vmatmul.mubr.msk.bf16.vlgmr.msra.gmra.mrb[4].mxu1 %vm259_vm1, %v371_v19 }
 0x19a   : > { %902 = vmatpush3.bf16.xpose.msra.mxu1 %v495_v23  ;;  %903 = vmatprep.mubr.msk.bf16.mxu1 %vm999_vm0, %v998_v0 }
 0x19b   : > { %913 = vmatprep.subr.bf16.mxu1 %v998_v0 }
 0x1a1   : > { %904 = vmatmul.mubr.msk.bf16.vlgmr.msra.gmra.mrb[8].mxu1 %vm259_vm1, %v488_v24 }
 0x1a2   : > { %914 = vmatpush3.bf16.xpose.msra.mxu1 %v606_v26  ;;  %915 = vmatprep.mubr.msk.bf16.mxu1 %vm999_vm0, %v998_v0 }
 0x1a9   : > { %916 = vmatmul.mubr.msk.bf16.vlgmr.msra.gmra.mrb[12].mxu1 %vm259_vm1, %v599_v27 }
 0x264   : > { %v1097_v28 = vpop.f32.mrb[0].mxu1 }
 0x265   : > { %v887_v29 = vpop.f32.mrb[1].mxu1 }
 0x266   : > { %v362_v30 = vpop.f32.mrb[2].mxu1 }
 0x267   : > { %v888_v31 = vpop.f32.mrb[3].mxu1 }
 0x26c   : > { %v417_v32 = vpop.f32.mrb[4].mxu1 }
 0x26d   : > { %v423_v33 = vmul.f32 0.17677669, %v417_v32  ;;  %v893_v34 = vpop.f32.mrb[5].mxu1 }
 0x26e   : > { %v420_v35 = vpop.f32.mrb[6].mxu1 }
 0x26f   : > { %v894_v36 = vpop.f32.mrb[7].mxu1  ;;  %v424_v37 = vsel %vm307_vm2, %v423_v33, -inf }
 0x270   : > { %425 = vmax.xlane.f32.xlu1 %v424_v37 }
 0x274   : > { %v531_v38 = vpop.f32.mrb[8].mxu1 }
 0x275   : > { %v537_v39 = vmul.f32 0.17677669, %v531_v38  ;;  %v905_v40 = vpop.f32.mrb[9].mxu1 }
 0x276   : > { %v534_v41 = vpop.f32.mrb[10].mxu1 }
 0x277   : > { %v538_v42 = vsel %vm307_vm2, %v537_v39, -inf  ;;  %v906_v43 = vpop.f32.mrb[11].mxu1 }
 0x278   : > { %539 = vmax.xlane.f32.xlu0 %v538_v42 }
 0x27c   : > { %v642_v44 = vpop.f32.mrb[12].mxu1 }
 0x27d   : > { %v917_v46 = vpop.f32.mrb[13].mxu1  ;;  %v648_v49 = vmul.f32 0.17677669, %v642_v44 }
 0x27e   : > { %v645_v47 = vpop.f32.mrb[14].mxu1 }
 0x27f   : > { %v918_v48 = vpop.f32.mrb[15].mxu1  ;;  %v649_v50 = vsel %vm307_vm2, %v648_v49, -inf }
 0x281   : > { %548 = vrot.lane.b32.xlu1 %v853_v45, %s1001_s24 }
 0x28e   : > { %437 = vrot.lane.b32.xlu0 %v853_v45, %s1000_s23 }
 0x2a5   : > { %650 = vmax.xlane.f32.xlu1 %v649_v50 }
 0x2b6   : > { %659 = vrot.lane.b32.xlu1 %v853_v45, %s1002_s25 }
 0x2fd   : > { %v426_v51 = vpop.xlane.xlu1 %425 }
 0x2fe   : > { %v427_v52 = vsub.f32 %v423_v33, %v426_v51 }
 0x300   : > { %v428_v53 = vmul.f32 1.442695, %v427_v52 }
 0x301   : > { %v549_v60 = vpop.permute.xlu1 %548 }
 0x302   : > { %960 = vpow2.f32 %v428_v53  ;;  %v554_v63 = vsel %vm321_vm3, %v549_v60, 0 }
 0x305   : > { %v540_v54 = vpop.xlane.xlu0 %539 }
 0x306   : > { %v541_v55 = vsub.f32 %v537_v39, %v540_v54 }
 0x308   : > { %v542_v56 = vmul.f32 1.442695, %v541_v55 }
 0x309   : > { %v438_v57 = vpop.permute.xlu0 %437 }
 0x30a   : > { %962 = vpow2.f32 %v542_v56  ;;  %v443_v58 = vsel %vm321_vm3, %v438_v57, 0 }
 0x30b   : > { %896 = vmatpush3.bf16.msra.mxu0 %v443_v58 }
 0x30c   : > { %v961_v59 = vpop.eup %960  ;;  %907 = vmatprep.subr.bf16.mxu0 %v998_v0 }
 0x30d   : > { %v430_v61 = vsel %vm307_vm2, %v961_v59, 0.0  ;;  %v433_v62 = vpack.c.bf16 %v961_v59, %v961_v59 }
 0x30e   : > { %431 = vadd.xlane.f32.xlu0 %v430_v61 }
 0x30f   : > { %898 = vmatmul.mubr.msk.bf16.vlgmr.msra.gmra.mrb[4].mxu0 %vm307_vm2, %v433_v62 }
 0x310   : > { %908 = vmatpush3.bf16.msra.mxu0 %v554_v63  ;;  %909 = vmatprep.mubr.msk.bf16.mxu0 %vm999_vm0, %v998_v0 }
 0x311   : > { %919 = vmatprep.subr.bf16.mxu0 %v998_v0 }
 0x314   : > { %v963_v1 = vpop.eup %962 }
 0x315   : > { %v544_v2 = vsel %vm307_vm2, %v963_v1, 0.0  ;;  %v547_v3 = vpack.c.bf16 %v963_v1, %v963_v1 }
 0x316   : > { %545 = vadd.xlane.f32.xlu1 %v544_v2 }
 0x317   : > { %910 = vmatmul.mubr.msk.bf16.vlgmr.msra.gmra.mrb[8].mxu0 %vm307_vm2, %v547_v3 }
 0x318   : > { %921 = vmatprep.mubr.msk.bf16.mxu0 %vm999_vm0, %v998_v0 }
 0x332   : > { %v651_v4 = vpop.xlane.xlu1 %650 }
 0x333   : > { %v652_v5 = vsub.f32 %v648_v49, %v651_v4 }
 0x335   : > { %v653_v6 = vmul.f32 1.442695, %v652_v5 }
 0x336   : > { %v660_v7 = vpop.permute.xlu1 %659 }
 0x337   : > { %964 = vpow2.f32 %v653_v6  ;;  %v665_v8 = vsel %vm321_vm3, %v660_v7, 0 }
 0x338   : > { %920 = vmatpush3.bf16.msra.mxu0 %v665_v8 }
 0x341   : > { %v965_v9 = vpop.eup %964 }
 0x342   : > { %v655_v10 = vsel %vm307_vm2, %v965_v9, 0.0  ;;  %v658_v11 = vpack.c.bf16 %v965_v9, %v965_v9 }
 0x343   : > { %656 = vadd.xlane.f32.xlu0 %v655_v10 }
 0x344   : > { %922 = vmatmul.mubr.msk.bf16.vlgmr.msra.gmra.mrb[12].mxu0 %vm307_vm2, %v658_v11 }
 0x347   : > { %315 = vadd.xlane.f32.xlu0 %v314_v12 }
 0x39b   : > { %v432_v0 = vpop.xlane.xlu0 %431 }
 0x39c   : > { %966 = vrcp.f32 %v432_v0 }
 0x3a3   : > { %v546_v13 = vpop.xlane.xlu1 %545 }
 0x3a4   : > { %968 = vrcp.f32 %v546_v13 }
 0x3a6   : > { %v967_v14 = vpop.eup %966 }
 0x3ae   : > { %v969_v21 = vpop.eup %968 }
 0x3d0   : > { %v657_v26 = vpop.xlane.xlu0 %656 }
 0x3d1   : > { %970 = vrcp.f32 %v657_v26 }
 0x3d4   : > { %v316_v34 = vpop.xlane.xlu0 %315 }
 0x3d5   : > { %972 = vrcp.f32 %v316_v34 }
 0x3db   : > { %v971_v27 = vpop.eup %970 }
 0x3df   : > { %v973_v35 = vpop.eup %972 }
 0x3e0   : > { %v366_v37 = vmul.f32 %v973_v35, %v1097_v28 }
 0x3e2   : > { %v479_v15 = vpop.f32.mrb[4].mxu0 }
 0x3e3   : > { %v486_v16 = vmul.f32 %v967_v14, %v479_v15  ;;  %v899_v17 = vpop.f32.mrb[5].mxu0 }
 0x3e4   : > { %v482_v19 = vpop.f32.mrb[6].mxu0 }
 0x3e5   : > { %710 = vrot.lane.b32.xlu1 %v486_v16, %s1002_s25  ;;  %v900_v20 = vpop.f32.mrb[7].mxu0 }
 0x3ea   : > { %v590_v22 = vpop.f32.mrb[8].mxu0 }
 0x3eb   : > { %v597_v23 = vmul.f32 %v969_v21, %v590_v22  ;;  %v911_v24 = vpop.f32.mrb[9].mxu0 }
 0x3ec   : > { %v593_v25 = vpop.f32.mrb[10].mxu0 }
 0x3ed   : > { %714 = vrot.lane.b32.xlu0 %v597_v23, %s1001_s24  ;;  %v912_v18 = vpop.f32.mrb[11].mxu0 }
 0x417   : > { %v701_v29 = vpop.f32.mrb[12].mxu0 }
 0x418   : > { %v708_v30 = vmul.f32 %v971_v27, %v701_v29  ;;  %v923_v31 = vpop.f32.mrb[13].mxu0 }
 0x419   : > { %v704_v32 = vpop.f32.mrb[14].mxu0 }
 0x41a   : > { %718 = vrot.lane.b32.xlu1 %v708_v30, %s1000_s23  ;;  %v924_v33 = vpop.f32.mrb[15].mxu0 }
 0x457   : > { %v711_v36 = vpop.permute.xlu1 %710 }
 0x458   : > { %v721_v39 = vsel %vm259_vm1, %v366_v37, %v711_v36 }
 0x45f   : > { %v715_v38 = vpop.permute.xlu0 %714 }
 0x460   : > { %v723_v40 = vsel %vm722_vm4, %v721_v39, %v715_v38 }
 0x48c   : > { %v719_v41 = vpop.permute.xlu1 %718 }
 0x48d   : > { %v725_v42 = vsel %vm724_vm5, %v723_v40, %v719_v41 }
 0x48e   : > { %v726_v43 = vpack.c.bf16 %v725_v42, %v725_v42 }
 0x490   : > { %727 = vst [vmem:[%s254_s5] sm:$0xf] %v726_v43 }
 0x491 PF: > { %s13_s14 = sadd.s32 1, %s996_s14   ;;  %s1144_s12 = smov %s992_s13 }
 0x492   : > { %p10_p5 = scmp.ge.s32.totalorder %s13_s14, 4   ;;  %s1145_s13 = smov %s1147_s15 }
 0x494   :  { %12 = sbr.rel (!%p10_p5) target bundleno = 2 (0x2), region = 68 }

// kernel: transformer_forward.66
= control target key start
LH: loop header
LB: loop body
LE: loop exit
PB: predicated region body
PF: predicated region fallthrough
CT: control target
= control target key end

     0   :  { %v270_v1 = vmov 0   ;;  %v191_v18 = vlaneseq  ;;  %s351_s1 = inlined_call_operand.vmem [shape: bf16[128,256], index: 1, kind: input, shape index: {}]   ;;  %s352_s0 = inlined_call_operand.vmem [shape: bf16[16,128], index: 0, kind: input, shape index: {}]   ;;  %s353_s2 = inlined_call_operand.vmem [shape: f32[1,256], index: 2, kind: input, shape index: {}]   ;;  %s354_s3 = inlined_call_operand.vmem [shape: bf16[16,256], index: 3, kind: output, shape index: {}]  }
   0x1   :  { %v245_v0 = vld [vmem:[%s351_s1 + $0x4] ss:$8 sps:$4 sm:$0xff]   ;;  %163 = vmatprep.mubr.bf16.mxu0 %v270_v1  ;;  %v247_v2 = vld [vmem:[%s351_s1] ss:$8 sps:$4 sm:$0xff]   ;;  %v248_v3 = vld [vmem:[%s351_s1 + $0x14] ss:$8 sps:$4 sm:$0xff]  }
   0x2   :  { %131 = vmatprep.subr.bf16.mxu0 %v245_v0  ;;  %v250_v4 = vld [vmem:[%s351_s1 + $0x10] ss:$8 sps:$4 sm:$0xff]   ;;  %v251_v5 = vld [vmem:[%s351_s1 + $0x24] ss:$8 sps:$4 sm:$0xff]   ;;  %v253_v6 = vld [vmem:[%s351_s1 + $0x20] ss:$8 sps:$4 sm:$0xff]  }
   0x3   :  { %132 = vmatpush1.bf16.msra.mxu0 %v247_v2  ;;  %v254_v7 = vld [vmem:[%s351_s1 + $0x34] ss:$8 sps:$4 sm:$0xff]   ;;  %v256_v8 = vld [vmem:[%s351_s1 + $0x30] ss:$8 sps:$4 sm:$0xff]   ;;  %v257_v9 = vld [vmem:[%s351_s1 + $0x44] ss:$8 sps:$4 sm:$0xff]  }
   0x4   :  { %133 = vmatprep.subr.bf16.mxu0 %v248_v3  ;;  %v259_v10 = vld [vmem:[%s351_s1 + $0x40] ss:$8 sps:$4 sm:$0xff]   ;;  %v260_v11 = vld [vmem:[%s351_s1 + $0x54] ss:$8 sps:$4 sm:$0xff]   ;;  %v262_v12 = vld [vmem:[%s351_s1 + $0x50] ss:$8 sps:$4 sm:$0xff]  }
   0x5   :  { %v263_v13 = vld [vmem:[%s351_s1 + $0x64] ss:$8 sps:$4 sm:$0xff]   ;;  %v265_v14 = vld [vmem:[%s351_s1 + $0x60] ss:$8 sps:$4 sm:$0xff]   ;;  %v266_v15 = vld [vmem:[%s351_s1 + $0x74] ss:$8 sps:$4 sm:$0xff]  }
   0x6   :  { %v268_v16 = vld [vmem:[%s351_s1 + $0x70] ss:$8 sps:$4 sm:$0xff]   ;;  %v269_v17 = vld [vmem:[%s352_s0] sm:$0xff]   ;;  %v192_v19 = vshrl.u32 %v191_v18, 7 }
   0x7   :  { %134 = vmatpush1.bf16.msra.mxu0 %v250_v4  ;;  %v189_v21 = vld [vmem:[%s353_s2] sm:$0x3] }
   0x8   :  { %135 = vmatprep.subr.bf16.mxu0 %v251_v5  ;;  %v193_v20 = vsub.s32 0, %v192_v19  ;;  %v197_v22 = vsub.s32 1, %v192_v19 }
   0xa   :  { %v194_v23 = vrot.slane %v189_v21, %v193_v20  ;;  %v198_v24 = vrot.slane %v189_v21, %v197_v22 }
   0xb   :  { %136 = vmatpush1.bf16.msra.mxu0 %v253_v6 }
   0xc   :  { %137 = vmatprep.subr.bf16.mxu0 %v254_v7 }
   0xf   :  { %138 = vmatpush1.bf16.msra.mxu0 %v256_v8 }
  0x10   :  { %139 = vmatprep.subr.bf16.mxu0 %v257_v9 }
  0x13   :  { %140 = vmatpush1.bf16.msra.mxu0 %v259_v10 }
  0x14   :  { %141 = vmatprep.subr.bf16.mxu0 %v260_v11 }
  0x17   :  { %142 = vmatpush1.bf16.msra.mxu0 %v262_v12 }
  0x18   :  { %143 = vmatprep.subr.bf16.mxu0 %v263_v13 }
  0x1b   :  { %144 = vmatpush1.bf16.msra.mxu0 %v265_v14 }
  0x1c   :  { %145 = vmatprep.subr.bf16.mxu0 %v266_v15 }
  0x1f   :  { %146 = vmatpush1.bf16.msra.mxu0 %v268_v16 }
  0x22   :  { %164 = vmatmul.mubr.bf16.vlgmr.msra.gmra.mrb[0].mxu0 %v269_v17 }
  0xf5   :  { %v165_v25 = vpop.f32.mrb[0].mxu0 }
  0xf6   :  { %v201_v26 = vadd.f32 %v194_v23, %v165_v25  ;;  %v167_v27 = vpop.f32.mrb[1].mxu0 }
  0xf7   :  { %v202_v28 = vadd.f32 %v198_v24, %v167_v27  ;;  %v169_v29 = vpop.f32.mrb[2].mxu0 }
  0xf8   :  { %v203_v30 = vadd.f32 %v194_v23, %v169_v29  ;;  %v171_v31 = vpop.f32.mrb[3].mxu0 }
  0xf9   :  { %v242_v32 = vpack.c.bf16 %v202_v28, %v201_v26  ;;  %v204_v33 = vadd.f32 %v198_v24, %v171_v31 }
  0xfb   :  { %217 = vst [vmem:[%s354_s3] sm:$0xff] %v242_v32  ;;  %v243_v34 = vpack.c.bf16 %v204_v33, %v203_v30 }
  0xfd   :  { %218 = vst [vmem:[%s354_s3 + $0x8] sm:$0xff] %v243_v34 }

// kernel: transformer_forward.41
= control target key start
LH: loop header
LB: loop body
LE: loop exit
PB: predicated region body
PF: predicated region fallthrough
CT: control target
= control target key end

     0   :  { %v483_v1 = vmov 0   ;;  %v41_v34 = vlaneseq  ;;  %s622_s1 = inlined_call_operand.vmem [shape: bf16[128,256], index: 1, kind: input, shape index: {}]   ;;  %s623_s0 = inlined_call_operand.vmem [shape: bf16[16,128], index: 0, kind: input, shape index: {}]   ;;  %s624_s3 = inlined_call_operand.vmem [shape: bf16[256,128], index: 3, kind: input, shape index: {}]   ;;  %s625_s2 = inlined_call_operand.vmem [shape: f32[1,256], index: 2, kind: input, shape index: {}]   ;;  %s626_s4 = inlined_call_operand.vmem [shape: f32[1,128], index: 4, kind: input, shape index: {}]   ;;  %s627_s5 = inlined_call_operand.vmem [shape: bf16[16,128], index: 5, kind: output, shape index: {}]  }
   0x1   :  { %v442_v0 = vld [vmem:[%s622_s1 + $0x4] ss:$8 sps:$4 sm:$0xff]   ;;  %169 = vmatprep.mubr.bf16.mxu0 %v483_v1  ;;  %v444_v2 = vld [vmem:[%s622_s1] ss:$8 sps:$4 sm:$0xff]   ;;  %v445_v3 = vld [vmem:[%s622_s1 + $0x14] ss:$8 sps:$4 sm:$0xff]  }
   0x2   :  { %137 = vmatprep.subr.bf16.mxu0 %v442_v0  ;;  %v447_v4 = vld [vmem:[%s622_s1 + $0x10] ss:$8 sps:$4 sm:$0xff]   ;;  %v448_v5 = vld [vmem:[%s622_s1 + $0x24] ss:$8 sps:$4 sm:$0xff]   ;;  %v450_v6 = vld [vmem:[%s622_s1 + $0x20] ss:$8 sps:$4 sm:$0xff]  }
   0x3   :  { %138 = vmatpush1.bf16.msra.mxu0 %v444_v2  ;;  %v451_v7 = vld [vmem:[%s622_s1 + $0x34] ss:$8 sps:$4 sm:$0xff]   ;;  %v453_v8 = vld [vmem:[%s622_s1 + $0x30] ss:$8 sps:$4 sm:$0xff]   ;;  %v454_v9 = vld [vmem:[%s622_s1 + $0x44] ss:$8 sps:$4 sm:$0xff]  }
   0x4   :  { %139 = vmatprep.subr.bf16.mxu0 %v445_v3  ;;  %v467_v10 = vld [vmem:[%s624_s3 + $0x40] sm:$0xff]   ;;  %v457_v13 = vld [vmem:[%s622_s1 + $0x54] ss:$8 sps:$4 sm:$0xff]   ;;  %v469_v14 = vld [vmem:[%s624_s3 + $0x48] sm:$0xff]   ;;  %v42_v35 = vshrl.u32 %v41_v34, 7 }
   0x5   :  { %v456_v11 = vld [vmem:[%s622_s1 + $0x40] ss:$8 sps:$4 sm:$0xff]   ;;  %419 = vmatprep.subr.bf16.mxu1 %v467_v10  ;;  %v471_v16 = vld [vmem:[%s624_s3 + $0x50] sm:$0xff]   ;;  %v460_v18 = vld [vmem:[%s622_s1 + $0x64] ss:$8 sps:$4 sm:$0xff]  }
   0x6   :  { %v468_v12 = vld [vmem:[%s624_s3] sm:$0xff]   ;;  %v470_v15 = vld [vmem:[%s624_s3 + $0x8] sm:$0xff]   ;;  %v459_v17 = vld [vmem:[%s622_s1 + $0x50] ss:$8 sps:$4 sm:$0xff]   ;;  %v43_v36 = vsub.s32 0, %v42_v35  ;;  %v47_v38 = vsub.s32 1, %v42_v35 }
   0x7   :  { %140 = vmatpush1.bf16.msra.mxu0 %v447_v4  ;;  %420 = vmatpush3.bf16.msra.mxu1 %v468_v12  ;;  %v472_v19 = vld [vmem:[%s624_s3 + $0x10] sm:$0xff]   ;;  %v473_v20 = vld [vmem:[%s624_s3 + $0x58] sm:$0xff]   ;;  %v462_v21 = vld [vmem:[%s622_s1 + $0x60] ss:$8 sps:$4 sm:$0xff]  }
   0x8   :  { %141 = vmatprep.subr.bf16.mxu0 %v448_v5  ;;  %421 = vmatprep.subr.bf16.mxu1 %v469_v14  ;;  %v463_v22 = vld [vmem:[%s622_s1 + $0x74] ss:$8 sps:$4 sm:$0xff]   ;;  %v475_v24 = vld [vmem:[%s624_s3 + $0x60] sm:$0xff]   ;;  %v465_v25 = vld [vmem:[%s622_s1 + $0x70] ss:$8 sps:$4 sm:$0xff]  }
   0x9   :  { %v474_v23 = vld [vmem:[%s624_s3 + $0x18] sm:$0xff]   ;;  %v476_v26 = vld [vmem:[%s624_s3 + $0x20] sm:$0xff]   ;;  %v477_v27 = vld [vmem:[%s624_s3 + $0x68] sm:$0xff]  }
   0xa   :  { %v466_v28 = vld [vmem:[%s623_s0] sm:$0xff]   ;;  %v478_v29 = vld [vmem:[%s624_s3 + $0x28] sm:$0xff]   ;;  %v479_v30 = vld [vmem:[%s624_s3 + $0x70] sm:$0xff]  }
   0xb   :  { %142 = vmatpush1.bf16.msra.mxu0 %v450_v6  ;;  %422 = vmatpush3.bf16.msra.mxu1 %v470_v15  ;;  %v480_v31 = vld [vmem:[%s624_s3 + $0x30] sm:$0xff]   ;;  %v481_v32 = vld [vmem:[%s624_s3 + $0x78] sm:$0xff]   ;;  %v39_v37 = vld [vmem:[%s625_s2] sm:$0x3] }
   0xc   :  { %143 = vmatprep.subr.bf16.mxu0 %v451_v7  ;;  %423 = vmatprep.subr.bf16.mxu1 %v471_v16  ;;  %v482_v33 = vld [vmem:[%s624_s3 + $0x38] sm:$0xff]   ;;  %v44_v39 = vrot.slane %v39_v37, %v43_v36  ;;  %v48_v40 = vrot.slane %v39_v37, %v47_v38  ;;  %v393_v59 = vld [vmem:[%s626_s4] ss:$0 sm:$0xff] }
   0xf   :  { %144 = vmatpush1.bf16.msra.mxu0 %v453_v8  ;;  %424 = vmatpush3.bf16.msra.mxu1 %v472_v19 }
  0x10   :  { %145 = vmatprep.subr.bf16.mxu0 %v454_v9  ;;  %425 = vmatprep.subr.bf16.mxu1 %v473_v20 }
  0x13   :  { %146 = vmatpush1.bf16.msra.mxu0 %v456_v11  ;;  %426 = vmatpush3.bf16.msra.mxu1 %v474_v23 }
  0x14   :  { %147 = vmatprep.subr.bf16.mxu0 %v457_v13  ;;  %427 = vmatprep.subr.bf16.mxu1 %v475_v24 }
  0x17   :  { %148 = vmatpush1.bf16.msra.mxu0 %v459_v17  ;;  %428 = vmatpush3.bf16.msra.mxu1 %v476_v26 }
  0x18   :  { %149 = vmatprep.subr.bf16.mxu0 %v460_v18  ;;  %429 = vmatprep.subr.bf16.mxu1 %v477_v27 }
  0x1b   :  { %150 = vmatpush1.bf16.msra.mxu0 %v462_v21  ;;  %430 = vmatpush3.bf16.msra.mxu1 %v478_v29 }
  0x1c   :  { %151 = vmatprep.subr.bf16.mxu0 %v463_v22  ;;  %431 = vmatprep.subr.bf16.mxu1 %v479_v30 }
  0x1f   :  { %152 = vmatpush1.bf16.msra.mxu0 %v465_v25  ;;  %432 = vmatpush3.bf16.msra.mxu1 %v480_v31 }
  0x20   :  { %433 = vmatprep.subr.bf16.mxu1 %v481_v32 }
  0x22   :  { %170 = vmatmul.mubr.bf16.vlgmr.msra.gmra.mrb[0].mxu0 %v466_v28 }
  0x23   :  { %434 = vmatpush3.bf16.msra.mxu1 %v482_v33 }
  0xf5   :  { %v171_v41 = vpop.f32.mrb[0].mxu0 }
  0xf6   :  { %v172_v42 = vadd.f32 %v171_v41, %v44_v39  ;;  %v173_v43 = vpop.f32.mrb[1].mxu0 }
  0xf7   :  { %v174_v44 = vadd.f32 %v173_v43, %v48_v40  ;;  %v175_v45 = vpop.f32.mrb[2].mxu0 }
  0xf8   :  { %v176_v46 = vadd.f32 %v175_v45, %v44_v39  ;;  %v177_v47 = vpop.f32.mrb[3].mxu0  ;;  %v180_v49 = vmax.f32 %v172_v42, 0.0 }
  0xf9   :  { %v178_v48 = vadd.f32 %v177_v47, %v48_v40  ;;  %v181_v51 = vmax.f32 %v174_v44, 0.0 }
  0xfa   :  { %v182_v50 = vmax.f32 %v176_v46, 0.0 }
  0xfb   :  { %v183_v52 = vmax.f32 %v178_v48, 0.0 }
  0xfc   :  { %v184_v53 = vpack.c.bf16 %v182_v50, %v180_v49 }
  0xfd   :  { %v185_v54 = vpack.c.bf16 %v183_v52, %v181_v51 }
  0xff   :  { %353 = vmatprep.mubr.bf16.mxu1 %v185_v54 }
 0x100   :  { %354 = vmatmul.mubr.bf16.vlgmr.msra.gmra.mrb[0].mxu1 %v184_v53 }
 0x1d3   :  { %v435_v55 = vpop.f32.mrb[0].mxu1 }
 0x1d4   :  { %v436_v56 = vpop.f32.mrb[1].mxu1 }
 0x1d5   :  { %v437_v57 = vadd.f32 %v436_v56, %v435_v55  ;;  %v438_v58 = vpop.f32.mrb[2].mxu1 }
 0x1d6   :  { %v439_v60 = vpop.f32.mrb[3].mxu1 }
 0x1d7   :  { %v440_v61 = vadd.f32 %v439_v60, %v438_v58  ;;  %v356_v62 = vadd.f32 %v437_v57, %v393_v59 }
 0x1d9   :  { %v359_v63 = vadd.f32 %v440_v61, %v393_v59 }
 0x1db   :  { %v417_v0 = vpack.c.bf16 %v359_v63, %v356_v62 }
 0x1dd   :  { %418 = vst [vmem:[%s627_s5] sm:$0xff] %v417_v0  }

// kernel: transformer_forward.49
= control target key start
LH: loop header
LB: loop body
LE: loop exit
PB: predicated region body
PF: predicated region fallthrough
CT: control target
= control target key end

     0   :  { %s124_s0 = inlined_call_operand.vmem [shape: bf16[16,128], index: 0, kind: input, shape index: {}]   ;;  %s125_s1 = inlined_call_operand.vmem [shape: f32[1,128], index: 1, kind: input, shape index: {}]   ;;  %s126_s2 = inlined_call_operand.vmem [shape: f32[1,128], index: 2, kind: input, shape index: {}]   ;;  %s127_s3 = inlined_call_operand.vmem [shape: bf16[16,128], index: 3, kind: output, shape index: {}]  }
   0x1   :  { %v80_v0 = vld [vmem:[%s124_s0] sm:$0xff]  }
   0x2   :  { %v81_v1 = vunpack.c.l.bf16 %v80_v0  ;;  %v82_v2 = vunpack.c.h.bf16 %v80_v0  ;;  %v73_v19 = vld [vmem:[%s125_s1] ss:$0 sm:$0xff] }
   0x3   :  { %v74_v23 = vld [vmem:[%s126_s2] ss:$0 sm:$0xff] }
   0x4   :  { %18 = vadd.xlane.f32.xlu0 %v81_v1 }
   0x8   :  { %20 = vadd.xlane.f32.xlu0 %v82_v2 }
  0x91   :  { %v19_v3 = vpop.xlane.xlu0 %18 }
  0x92   :  { %v23_v4 = vmul.f32 0.0078125, %v19_v3 }
  0x94   :  { %v25_v5 = vsub.f32 %v81_v1, %v23_v4 }
  0x95   :  { %v21_v6 = vpop.xlane.xlu0 %20 }
  0x96   :  { %v24_v7 = vmul.f32 0.0078125, %v21_v6  ;;  %v27_v8 = vmul.f32 %v25_v5, %v25_v5 }
  0x98   :  { %v26_v9 = vsub.f32 %v82_v2, %v24_v7  ;;  %29 = vadd.xlane.f32.xlu1 %v27_v8 }
  0x9a   :  { %v28_v10 = vmul.f32 %v26_v9, %v26_v9 }
  0x9c   :  { %31 = vadd.xlane.f32.xlu1 %v28_v10 }
 0x125   :  { %v30_v11 = vpop.xlane.xlu1 %29 }
 0x126   :  { %v33_v12 = vmul.f32 0.0078125, %v30_v11 }
 0x128   :  { %v35_v13 = vadd.f32 1e-05, %v33_v12 }
 0x129   :  { %v32_v14 = vpop.xlane.xlu1 %31 }
 0x12a   :  { %88 = vrsqrt.f32 %v35_v13  ;;  %v34_v15 = vmul.f32 0.0078125, %v32_v14 }
 0x12c   :  { %v36_v16 = vadd.f32 1e-05, %v34_v15 }
 0x12e   :  { %90 = vrsqrt.f32 %v36_v16 }
 0x134   :  { %v89_v17 = vpop.eup %88 }
 0x135   :  { %v39_v18 = vmul.f32 %v89_v17, %v25_v5 }
 0x137   :  { %v48_v21 = vmul.f32 %v73_v19, %v39_v18 }
 0x138   :  { %v91_v20 = vpop.eup %90 }
 0x139   :  { %v40_v22 = vmul.f32 %v91_v20, %v26_v9  ;;  %v57_v25 = vadd.f32 %v74_v23, %v48_v21 }
 0x13b   :  { %v49_v24 = vmul.f32 %v73_v19, %v40_v22 }
 0x13d   :  { %v58_v26 = vadd.f32 %v74_v23, %v49_v24 }
 0x13f   :  { %v86_v27 = vpack.c.bf16 %v58_v26, %v57_v25 }
 0x141   :  { %87 = vst [vmem:[%s127_s3] sm:$0xff] %v86_v27  }

// kernel: transformer_forward.56
= control target key start
LH: loop header
LB: loop body
LE: loop exit
PB: predicated region body
PF: predicated region fallthrough
CT: control target
= control target key end

     0   :  { %s1016_s12 = smov 0   ;;  %s1018_s13 = smov 0   ;;  %s1136_s0 = inlined_call_operand.vmem [shape: bf16[2,8,128], index: 0, kind: input, shape index: {}]   ;;  %s1137_s1 = inlined_call_operand.vmem [shape: bf16[2,8,256], index: 1, kind: input, shape index: {}, may-alias: {1,2}]   ;;  %s1138_s2 = inlined_call_operand.vmem [shape: bf16[2,8,256], index: 2, kind: input, shape index: {}, may-alias: {1,2}]   ;;  %s1139_s3 = inlined_call_operand.vmem [shape: bf16[2,8,128], index: 3, kind: output, shape index: {}]  }
   0x1   :  { %s1020_s14 = smov 0  }
   0x2 LB: > { %s25_s15 = sadd.s32 1, %s985_s13  ;;  %p832_p0 = scmp.ge.s32.totalorder %s989_s14, 1  ;;  %s989_s14 = sphi %s1020_s14, %s13_s14   ;;  %s985_s13 = sphi %s1018_s13, %s1141_s13   ;;  %s981_s12 = sphi %s1016_s12, %s1140_s12  }
   0x3   : > { %p27_p1 = scmp.ge.s32.totalorder %s25_s15, 2  ;;  %p181_p2 = scmp.lt.s32.totalorder %s989_s14, 3 }
   0x5   : > { %s1143_s15 = smov (%p27_p1, %s25_s15), 0  ;;  %p182_p3 = pnand %p832_p0, %p181_p2 }
   0x6   : > { %p222_p4 = scmp.lt.s32.totalorder (!%p182_p3), %s981_s12, 1  ;;  %v991_v0 = vmov (!%p182_p3), 0.0   ;;  %vm992_vm0 = vmmov (!%p182_p3), 0   ;;  %vm253_vm1 = vcmask (!%p182_p3), 261120   ;;  %s993_s24 = smov (!%p182_p3), 96   ;;  %vm301_vm2 = vcmask (!%p182_p3), 64512  }
   0x7   : > { %185 = sbr.rel (%p182_p3) target bundleno = 1168 (0x490), region = 32  ;;  %871 = vmatprep.subr.bf16.mxu0 (!%p182_p3), %v991_v0  ;;  %873 = vmatprep.mubr.msk.bf16.mxu0 (!%p182_p3), %vm992_vm0, %v991_v0  ;;  %s994_s25 = smov (!%p182_p3), 64   ;;  %vm315_vm3 = vcmask (!%p182_p3), 1043456   ;;  %vm716_vm4 = vcmask (!%p182_p3), 523264   ;;  %vm718_vm5 = vcmask (!%p182_p3), 785408  }
   0x8   : > { %877 = vmatprep.subr.bf16.mxu1 (!%p182_p3), %v991_v0  ;;  %879 = vmatprep.mubr.msk.bf16.mxu1 (!%p182_p3), %vm992_vm0, %v991_v0  ;;  %s995_s26 = smov (!%p182_p3), 32  }
   0xe   : > { %s1145_s12 = smov (!%p222_p4, %s981_s12), 1 }
   0xf   : > { %s853_s16 = sshll.u32 %s1145_s12, 3  ;;  %s833_s20 = sshll.u32 %s1145_s12, 2 }
  0x10   : > { %s234_s19 = scalar_lea.vmem %s1137_s1, %s853_s16  ;;  %s225_s23 = scalar_lea.vmem %s1136_s0, %s833_s20 }
  0x11   : > { %v251_v1 = vld [vmem:[%s234_s19] sm:$0xf]  ;;  %s780_s29 = scalar_lea.vmem %s1138_s2, %s853_s16  ;;  %s248_s5 = scalar_lea.vmem %s1139_s3, %s833_s20 }
  0x12   : > { %v258_v2 = vsel %vm253_vm1, %v251_v1, 0  ;;  %v250_v3 = vld [vmem:[%s225_s23] sm:$0xf]  ;;  %v843_v5 = vcombine.low %v251_v1, %v251_v1  ;;  %v839_v12 = vld [vmem:[%s780_s29 + $0x4] sm:$0xf] }
  0x13   : > { %872 = vmatpush3.bf16.xpose.msra.mxu0 %v258_v2  ;;  %v842_v4 = vcombine.low %v250_v3, %v250_v3  ;;  %v317_v13 = vsel %vm315_vm3, %v839_v12, 0  ;;  %v845_v45 = vcombine.low %v839_v12, %v839_v12 }
  0x14   : > { %889 = vmatprep.subr.bf16.mxu0 %v991_v0  ;;  %878 = vmatpush3.bf16.msra.mxu1 %v317_v13 }
  0x15   : > { %364 = vrot.lane.b32.xlu1 %v842_v4, %s993_s24  ;;  %883 = vmatprep.subr.bf16.mxu1 %v991_v0 }
  0x19   : > { %483 = vrot.lane.b32.xlu1 %v843_v5, %s994_s25 }
  0x1a   : > { %874 = vmatmul.mubr.msk.bf16.vlgmr.msra.gmra.mrb[0].mxu0 %vm253_vm1, %v250_v3 }
  0x1b   : > { %891 = vmatprep.mubr.msk.bf16.mxu0 %vm992_vm0, %v991_v0 }
  0x1d   : > { %481 = vrot.lane.b32.xlu1 %v842_v4, %s994_s25 }
  0x21   : > { %594 = vrot.lane.b32.xlu1 %v843_v5, %s995_s26 }
  0x25   : > { %592 = vrot.lane.b32.xlu1 %v842_v4, %s995_s26 }
  0x87   : > { %v365_v19 = vpop.permute.xlu1 %364 }
  0x8b   : > { %v484_v22 = vpop.permute.xlu1 %483 }
  0x8c   : > { %v489_v23 = vsel %vm253_vm1, %v484_v22, 0 }
  0x8f   : > { %v482_v24 = vpop.permute.xlu1 %481 }
  0x93   : > { %v595_v25 = vpop.permute.xlu1 %594 }
  0x94   : > { %v600_v26 = vsel %vm253_vm1, %v595_v25, 0 }
  0x97   : > { %v593_v27 = vpop.permute.xlu1 %592 }
  0xed   : > { %v294_v6 = vpop.f32.mrb[0].mxu0 }
  0xee   : > { %v300_v7 = vmul.f32 0.17677669, %v294_v6  ;;  %v875_v8 = vpop.f32.mrb[1].mxu0 }
  0xef   : > { %v297_v9 = vpop.f32.mrb[2].mxu0 }
  0xf0   : > { %v876_v10 = vpop.f32.mrb[3].mxu0  ;;  %v302_v11 = vsel %vm301_vm2, %v300_v7, -inf }
  0xf1   : > { %303 = vmax.xlane.f32.xlu0 %v302_v11 }
 0x107   : > { %369 = vrot.lane.b32.xlu0 %v843_v5, %s993_s24 }
 0x17e   : > { %v304_v14 = vpop.xlane.xlu0 %303 }
 0x17f   : > { %v305_v15 = vsub.f32 %v300_v7, %v304_v14 }
 0x181   : > { %v306_v16 = vmul.f32 1.442695, %v305_v15 }
 0x182   : > { %v370_v17 = vpop.permute.xlu0 %369 }
 0x183   : > { %951 = vpow2.f32 %v306_v16  ;;  %v375_v20 = vsel %vm253_vm1, %v370_v17, 0 }
 0x18d   : > { %v1073_v18 = vpop.eup %951 }
 0x18e   : > { %v311_v21 = vpack.c.bf16 %v1073_v18, %v1073_v18  ;;  %v308_v12 = vsel %vm301_vm2, %v1073_v18, 0.0 }
 0x190   : > { %880 = vmatmul.mubr.msk.bf16.vlgmr.msra.gmra.mrb[0].mxu1 %vm301_vm2, %v311_v21 }
 0x191   : > { %884 = vmatpush3.bf16.xpose.msra.mxu1 %v375_v20  ;;  %885 = vmatprep.mubr.msk.bf16.mxu1 %vm992_vm0, %v991_v0 }
 0x192   : > { %895 = vmatprep.subr.bf16.mxu1 %v991_v0 }
 0x198   : > { %886 = vmatmul.mubr.msk.bf16.vlgmr.msra.gmra.mrb[4].mxu1 %vm253_vm1, %v365_v19 }
 0x199   : > { %896 = vmatpush3.bf16.xpose.msra.mxu1 %v489_v23  ;;  %897 = vmatprep.mubr.msk.bf16.mxu1 %vm992_vm0, %v991_v0 }
 0x19a   : > { %907 = vmatprep.subr.bf16.mxu1 %v991_v0 }
 0x1a0   : > { %898 = vmatmul.mubr.msk.bf16.vlgmr.msra.gmra.mrb[8].mxu1 %vm253_vm1, %v482_v24 }
 0x1a1   : > { %908 = vmatpush3.bf16.xpose.msra.mxu1 %v600_v26  ;;  %909 = vmatprep.mubr.msk.bf16.mxu1 %vm992_vm0, %v991_v0 }
 0x1a8   : > { %910 = vmatmul.mubr.msk.bf16.vlgmr.msra.gmra.mrb[12].mxu1 %vm253_vm1, %v593_v27 }
 0x263   : > { %v1092_v28 = vpop.f32.mrb[0].mxu1 }
 0x264   : > { %v881_v29 = vpop.f32.mrb[1].mxu1 }
 0x265   : > { %v356_v30 = vpop.f32.mrb[2].mxu1 }
 0x266   : > { %v882_v31 = vpop.f32.mrb[3].mxu1 }
 0x26b   : > { %v411_v32 = vpop.f32.mrb[4].mxu1 }
 0x26c   : > { %v417_v33 = vmul.f32 0.17677669, %v411_v32  ;;  %v887_v34 = vpop.f32.mrb[5].mxu1 }
 0x26d   : > { %v414_v35 = vpop.f32.mrb[6].mxu1 }
 0x26e   : > { %v888_v36 = vpop.f32.mrb[7].mxu1  ;;  %v418_v37 = vsel %vm301_vm2, %v417_v33, -inf }
 0x26f   : > { %419 = vmax.xlane.f32.xlu1 %v418_v37 }
 0x273   : > { %v525_v38 = vpop.f32.mrb[8].mxu1 }
 0x274   : > { %v531_v39 = vmul.f32 0.17677669, %v525_v38  ;;  %v899_v40 = vpop.f32.mrb[9].mxu1 }
 0x275   : > { %v528_v41 = vpop.f32.mrb[10].mxu1 }
 0x276   : > { %v532_v42 = vsel %vm301_vm2, %v531_v39, -inf  ;;  %v900_v43 = vpop.f32.mrb[11].mxu1 }
 0x277   : > { %533 = vmax.xlane.f32.xlu0 %v532_v42 }
 0x27b   : > { %v636_v44 = vpop.f32.mrb[12].mxu1 }
 0x27c   : > { %v911_v46 = vpop.f32.mrb[13].mxu1  ;;  %v642_v49 = vmul.f32 0.17677669, %v636_v44 }
 0x27d   : > { %v639_v47 = vpop.f32.mrb[14].mxu1 }
 0x27e   : > { %v912_v48 = vpop.f32.mrb[15].mxu1  ;;  %v643_v50 = vsel %vm301_vm2, %v642_v49, -inf }
 0x280   : > { %542 = vrot.lane.b32.xlu1 %v845_v45, %s994_s25 }
 0x28d   : > { %431 = vrot.lane.b32.xlu0 %v845_v45, %s993_s24 }
 0x2a4   : > { %644 = vmax.xlane.f32.xlu1 %v643_v50 }
 0x2b5   : > { %653 = vrot.lane.b32.xlu1 %v845_v45, %s995_s26 }
 0x2fc   : > { %v420_v51 = vpop.xlane.xlu1 %419 }
 0x2fd   : > { %v421_v52 = vsub.f32 %v417_v33, %v420_v51 }
 0x2ff   : > { %v422_v53 = vmul.f32 1.442695, %v421_v52 }
 0x300   : > { %v543_v60 = vpop.permute.xlu1 %542 }
 0x301   : > { %953 = vpow2.f32 %v422_v53  ;;  %v548_v63 = vsel %vm315_vm3, %v543_v60, 0 }
 0x304   : > { %v534_v54 = vpop.xlane.xlu0 %533 }
 0x305   : > { %v535_v55 = vsub.f32 %v531_v39, %v534_v54 }
 0x307   : > { %v536_v56 = vmul.f32 1.442695, %v535_v55 }
 0x308   : > { %v432_v57 = vpop.permute.xlu0 %431 }
 0x309   : > { %955 = vpow2.f32 %v536_v56  ;;  %v437_v58 = vsel %vm315_vm3, %v432_v57, 0 }
 0x30a   : > { %890 = vmatpush3.bf16.msra.mxu0 %v437_v58 }
 0x30b   : > { %v954_v59 = vpop.eup %953  ;;  %901 = vmatprep.subr.bf16.mxu0 %v991_v0 }
 0x30c   : > { %v424_v61 = vsel %vm301_vm2, %v954_v59, 0.0  ;;  %v427_v62 = vpack.c.bf16 %v954_v59, %v954_v59 }
 0x30d   : > { %425 = vadd.xlane.f32.xlu0 %v424_v61 }
 0x30e   : > { %892 = vmatmul.mubr.msk.bf16.vlgmr.msra.gmra.mrb[4].mxu0 %vm301_vm2, %v427_v62 }
 0x30f   : > { %902 = vmatpush3.bf16.msra.mxu0 %v548_v63  ;;  %903 = vmatprep.mubr.msk.bf16.mxu0 %vm992_vm0, %v991_v0 }
 0x310   : > { %913 = vmatprep.subr.bf16.mxu0 %v991_v0 }
 0x313   : > { %v956_v1 = vpop.eup %955 }
 0x314   : > { %v538_v2 = vsel %vm301_vm2, %v956_v1, 0.0  ;;  %v541_v3 = vpack.c.bf16 %v956_v1, %v956_v1 }
 0x315   : > { %539 = vadd.xlane.f32.xlu1 %v538_v2 }
 0x316   : > { %904 = vmatmul.mubr.msk.bf16.vlgmr.msra.gmra.mrb[8].mxu0 %vm301_vm2, %v541_v3 }
 0x317   : > { %915 = vmatprep.mubr.msk.bf16.mxu0 %vm992_vm0, %v991_v0 }
 0x331   : > { %v645_v4 = vpop.xlane.xlu1 %644 }
 0x332   : > { %v646_v5 = vsub.f32 %v642_v49, %v645_v4 }
 0x334   : > { %v647_v6 = vmul.f32 1.442695, %v646_v5 }
 0x335   : > { %v654_v7 = vpop.permute.xlu1 %653 }
 0x336   : > { %957 = vpow2.f32 %v647_v6  ;;  %v659_v8 = vsel %vm315_vm3, %v654_v7, 0 }
 0x337   : > { %914 = vmatpush3.bf16.msra.mxu0 %v659_v8 }
 0x340   : > { %v958_v9 = vpop.eup %957 }
 0x341   : > { %v649_v10 = vsel %vm301_vm2, %v958_v9, 0.0  ;;  %v652_v11 = vpack.c.bf16 %v958_v9, %v958_v9 }
 0x342   : > { %650 = vadd.xlane.f32.xlu0 %v649_v10 }
 0x343   : > { %916 = vmatmul.mubr.msk.bf16.vlgmr.msra.gmra.mrb[12].mxu0 %vm301_vm2, %v652_v11 }
 0x346   : > { %309 = vadd.xlane.f32.xlu0 %v308_v12 }
 0x39a   : > { %v426_v0 = vpop.xlane.xlu0 %425 }
 0x39b   : > { %959 = vrcp.f32 %v426_v0 }
 0x3a2   : > { %v540_v13 = vpop.xlane.xlu1 %539 }
 0x3a3   : > { %961 = vrcp.f32 %v540_v13 }
 0x3a5   : > { %v960_v14 = vpop.eup %959 }
 0x3ad   : > { %v962_v21 = vpop.eup %961 }
 0x3cf   : > { %v651_v26 = vpop.xlane.xlu0 %650 }
 0x3d0   : > { %963 = vrcp.f32 %v651_v26 }
 0x3d3   : > { %v310_v34 = vpop.xlane.xlu0 %309 }
 0x3d4   : > { %965 = vrcp.f32 %v310_v34 }
 0x3da   : > { %v964_v27 = vpop.eup %963 }
 0x3de   : > { %v966_v35 = vpop.eup %965 }
 0x3df   : > { %v360_v37 = vmul.f32 %v966_v35, %v1092_v28 }
 0x3e1   : > { %v473_v15 = vpop.f32.mrb[4].mxu0 }
 0x3e2   : > { %v480_v16 = vmul.f32 %v960_v14, %v473_v15  ;;  %v893_v17 = vpop.f32.mrb[5].mxu0 }
 0x3e3   : > { %v476_v19 = vpop.f32.mrb[6].mxu0 }
 0x3e4   : > { %704 = vrot.lane.b32.xlu1 %v480_v16, %s995_s26  ;;  %v894_v20 = vpop.f32.mrb[7].mxu0 }
 0x3e9   : > { %v584_v22 = vpop.f32.mrb[8].mxu0 }
 0x3ea   : > { %v591_v23 = vmul.f32 %v962_v21, %v584_v22  ;;  %v905_v24 = vpop.f32.mrb[9].mxu0 }
 0x3eb   : > { %v587_v25 = vpop.f32.mrb[10].mxu0 }
 0x3ec   : > { %708 = vrot.lane.b32.xlu0 %v591_v23, %s994_s25  ;;  %v906_v18 = vpop.f32.mrb[11].mxu0 }
 0x416   : > { %v695_v29 = vpop.f32.mrb[12].mxu0 }
 0x417   : > { %v702_v30 = vmul.f32 %v964_v27, %v695_v29  ;;  %v917_v31 = vpop.f32.mrb[13].mxu0 }
 0x418   : > { %v698_v32 = vpop.f32.mrb[14].mxu0 }
 0x419   : > { %712 = vrot.lane.b32.xlu1 %v702_v30, %s993_s24  ;;  %v918_v33 = vpop.f32.mrb[15].mxu0 }
 0x456   : > { %v705_v36 = vpop.permute.xlu1 %704 }
 0x457   : > { %v715_v39 = vsel %vm253_vm1, %v360_v37, %v705_v36 }
 0x45e   : > { %v709_v38 = vpop.permute.xlu0 %708 }
 0x45f   : > { %v717_v40 = vsel %vm716_vm4, %v715_v39, %v709_v38 }
 0x48b   : > { %v713_v41 = vpop.permute.xlu1 %712 }
 0x48c   : > { %v719_v42 = vsel %vm718_vm5, %v717_v40, %v713_v41 }
 0x48d   : > { %v720_v43 = vpack.c.bf16 %v719_v42, %v719_v42 }
 0x48f   : > { %721 = vst [vmem:[%s248_s5] sm:$0xf] %v720_v43 }
 0x490 PF: > { %s13_s14 = sadd.s32 1, %s989_s14   ;;  %s1140_s12 = smov %s985_s13 }
 0x491   : > { %p10_p5 = scmp.ge.s32.totalorder %s13_s14, 4   ;;  %s1141_s13 = smov %s1143_s15 }
 0x493   :  { %12 = sbr.rel (!%p10_p5) target bundleno = 2 (0x2), region = 68 }

// kernel: transformer_forward.73
= control target key start
LH: loop header
LB: loop body
LE: loop exit
PB: predicated region body
PF: predicated region fallthrough
CT: control target
= control target key end

     0   :  { %vm19_vm0 = vcmask 130048   ;;  %v212_v0 = vmov 0.0   ;;  %vm213_vm1 = vmmov 0   ;;  %s276_s1 = inlined_call_operand.vmem [shape: bf16[128,16], index: 1, kind: input, shape index: {}]   ;;  %s277_s0 = inlined_call_operand.vmem [shape: bf16[16,128], index: 0, kind: input, shape index: {}]   ;;  %s278_s2 = inlined_call_operand.vmem [shape: f32[1,16], index: 2, kind: input, shape index: {}]   ;;  %s279_s3 = inlined_call_operand.vmem [shape: f32[16,16], index: 3, kind: output, shape index: {}]  }
   0x1   :  { %181 = vmatprep.subr.bf16.mxu0 %v212_v0  ;;  %v203_v1 = vld [vmem:[%s276_s1] sm:$0xff]   ;;  %197 = vmatprep.mubr.msk.bf16.mxu0 %vm213_vm1, %v212_v0  ;;  %20 = vst.msk [vmem:[#allocation2] sm:$0xff] %vm19_vm0, %v212_v0  ;;  %21 = vst.msk [vmem:[#allocation2 + $0x8] sm:$0xff] %vm19_vm0, %v212_v0  ;;  %v204_v2 = vld [vmem:[%s276_s1 + $0x8] sm:$0xff]  }
   0x2   :  { %182 = vmatpush3.bf16.msra.mxu0 %v203_v1  ;;  %v205_v3 = vld [vmem:[%s276_s1 + $0x10] sm:$0xff]   ;;  %v206_v4 = vld [vmem:[%s276_s1 + $0x18] sm:$0xff]   ;;  %v207_v5 = vld [vmem:[%s276_s1 + $0x20] sm:$0xff]  }
   0x3   :  { %183 = vmatprep.subr.bf16.mxu0 %v212_v0  ;;  %v208_v6 = vld [vmem:[%s276_s1 + $0x28] sm:$0xff]   ;;  %v209_v7 = vld [vmem:[%s276_s1 + $0x30] sm:$0xff]   ;;  %v210_v8 = vld [vmem:[%s276_s1 + $0x38] sm:$0xff]  }
   0x4   :  { %v211_v9 = vld [vmem:[%s277_s0] sm:$0xff]  }
   0x5   :  { %v171_v18 = vld [vmem:[%s278_s2] ss:$0 sm:$0xff] }
   0x6   :  { %184 = vmatpush3.bf16.msra.mxu0 %v204_v2 }
   0x7   :  { %185 = vmatprep.subr.bf16.mxu0 %v212_v0 }
   0x8   :  { %v22_v10 = vld [vmem:[#allocation2] sm:$0xff]  ;;  %v23_v12 = vld [vmem:[#allocation2 + $0x8] sm:$0xff] }
   0xa   :  { %186 = vmatpush3.bf16.msra.mxu0 %v205_v3 }
   0xb   :  { %187 = vmatprep.subr.bf16.mxu0 %v212_v0 }
   0xe   :  { %188 = vmatpush3.bf16.msra.mxu0 %v206_v4 }
   0xf   :  { %189 = vmatprep.subr.bf16.mxu0 %v212_v0 }
  0x12   :  { %190 = vmatpush3.bf16.msra.mxu0 %v207_v5 }
  0x13   :  { %191 = vmatprep.subr.bf16.mxu0 %v212_v0 }
  0x16   :  { %192 = vmatpush3.bf16.msra.mxu0 %v208_v6 }
  0x17   :  { %193 = vmatprep.subr.bf16.mxu0 %v212_v0 }
  0x1a   :  { %194 = vmatpush3.bf16.msra.mxu0 %v209_v7 }
  0x1b   :  { %195 = vmatprep.subr.bf16.mxu0 %v212_v0 }
  0x1e   :  { %196 = vmatpush3.bf16.msra.mxu0 %v210_v8 }
  0x21   :  { %198 = vmatmul.mubr.bf16.vlgmr.msra.gmra.mrb[0].mxu0 %v211_v9 }
  0xf4   :  { %v130_v11 = vpop.f32.mrb[0].mxu0 }
  0xf5   :  { %v137_v13 = vadd.f32 %v130_v11, %v22_v10  ;;  %v199_v14 = vpop.f32.mrb[1].mxu0 }
  0xf6   :  { %v133_v15 = vpop.f32.mrb[2].mxu0 }
  0xf7   :  { %140 = vst.msk [vmem:[#allocation2] sm:$0xff] %vm19_vm0, %v137_v13  ;;  %v138_v16 = vadd.f32 %v133_v15, %v23_v12  ;;  %v200_v17 = vpop.f32.mrb[3].mxu0 }
  0xf9   :  { %141 = vst.msk [vmem:[#allocation2 + $0x8] sm:$0xff] %vm19_vm0, %v138_v16 }
  0xfe   :  { %v145_v19 = vld [vmem:[#allocation2] sm:$0xff] }
  0xff   :  { %v154_v20 = vadd.f32 %v171_v18, %v145_v19 }
 0x100   :  { %v146_v21 = vld [vmem:[#allocation2 + $0x8] sm:$0xff] }
 0x101   :  { %156 = vst.msk [vmem:[%s279_s3] sm:$0xff] %vm19_vm0, %v154_v20  ;;  %v155_v22 = vadd.f32 %v171_v18, %v146_v21 }
 0x103   :  { %157 = vst.msk [vmem:[%s279_s3 + $0x8] sm:$0xff] %vm19_vm0, %v155_v22 }

</bundles_post_ra>
